<compile_context>
chip_gen: v7x
topology: tpu7x:2x2x1
jax: 0.10.0
libtpu: 0.0.40
codegen_flags: <defaults>
</compile_context>

<pallas_src>
import functools

import jax
import jax.numpy as jnp
from jax.experimental import pallas as pl
from jax.experimental.pallas import tpu as pltpu


def _round_up(x, m):
    return ((x + m - 1) // m) * m


def _field_sum_lanes(x, num_fields, embedding_dim):
    """Cyclic field-sum of a lane-dense [TB, F*E] tensor via XLU rolls.

    Afterwards every lane i holds sum_f x[:, (i mod E) + f*E]; in particular
    lanes [0, E) hold the per-embedding-dim field sums.  Roll-direction
    independent because the shifts generate the full cyclic group."""
    if num_fields <= 1:
        return x
    if num_fields & (num_fields - 1) == 0:          # power of two: log2(F) rolls
        n = num_fields
        while n > 1:
            n //= 2
            x = x + pltpu.roll(x, shift=n * embedding_dim, axis=1)
        return x
    acc = x                                         # general F: F-1 rolls
    for f in range(1, num_fields):
        acc = acc + pltpu.roll(x, shift=f * embedding_dim, axis=1)
    return acc


def deepfm_kernel(flat_ref, w1_ref, b1_ref, w2_ref, b2_ref, w3_ref, b3_ref,
                  w4ss_ref, w4sq_ref, w4dnn_ref, b4_ref, pred_ref,
                  *, num_fields, embedding_dim, relu_bf16):
    # flat_ref:   [TB, F*E] f32, embeddings already scaled by feature_vals
    # w1/w2/w3:   bf16, zero-padded lane-dense; b1/b2/b3: f32 rows
    # w4ss_ref:   [1, F*E] f32, 0.5*w4_fm in lanes [0,E), zeros elsewhere
    # w4sq_ref:   [1, F*E] f32, 0.5*w4_fm tiled across all F field groups
    # w4dnn_ref:  [1, Hpad] f32 (fc4 DNN columns, zero padded)
    # b4_ref:     [1, 1]    f32 in SMEM
    flat = flat_ref[...]                                         # f32 [TB, FE]

    # ---- FM second-order term (f32) ----------------------------------------
    # One roll butterfly gives the field sums; the square-sum contribution is a
    # direct lane reduction of flat^2 against the field-tiled 0.5*w4 row, so
    # the second butterfly and the explicit 0.5 scale disappear.
    s = _field_sum_lanes(flat, num_fields, embedding_dim)
    fm_terms = s * s * w4ss_ref[...] - flat * flat * w4sq_ref[...]
    fm_contrib = jnp.sum(fm_terms, axis=-1)                      # [TB]

    # ---- DNN tower: bf16 MXU matmuls, f32 accumulation ----------------------
    def relu_to_bf16(h):
        if relu_bf16:   # v6e/v7x: bf16 VALU -> half-cost epilogue pass
            return jnp.maximum(h.astype(jnp.bfloat16), 0.0)
        return jnp.maximum(h, 0.0).astype(jnp.bfloat16)          # v5e: f32 VALU

    x = flat.astype(jnp.bfloat16)
    h = jnp.dot(x, w1_ref[...], preferred_element_type=jnp.float32) + b1_ref[...]
    h = relu_to_bf16(h)
    h = jnp.dot(h, w2_ref[...], preferred_element_type=jnp.float32) + b2_ref[...]
    h = relu_to_bf16(h)
    h = jnp.dot(h, w3_ref[...], preferred_element_type=jnp.float32) + b3_ref[...]
    h = jnp.maximum(h, 0.0)                                      # f32 [TB, Hpad]

    # ---- fc4 as VPU multiply + cross-lane reduce (no N=1 matmul) ------------
    dnn_contrib = jnp.sum(h * w4dnn_ref[...], axis=-1)           # [TB]
    pred_ref[...] = (fm_contrib + dnn_contrib + b4_ref[0, 0])[None, :]


def init_params(key, num_features, embedding_dim, num_fields, hidden_size=400):
    """Deterministic synthetic parameters matching the PyTorch module shapes."""
    F = num_fields - 1                     # module does num_fields -= 1
    input_dim = embedding_dim * F
    last_layer_dim = 400                   # hardcoded in the module
    ks = jax.random.split(key, 10)

    def xavier(k, fan_in, fan_out, shape):
        std = (2.0 / (fan_in + fan_out)) ** 0.5
        return (std * jax.random.normal(k, shape)).astype(jnp.float32)

    def linear(k, d_in, d_out):
        k_w, k_b = jax.random.split(k)
        bound = 1.0 / (d_in ** 0.5)
        w = jax.random.uniform(k_w, (d_in, d_out), jnp.float32, -bound, bound)
        b = jax.random.uniform(k_b, (1, d_out), jnp.float32, -bound, bound)
        return w, b

    emb_table = xavier(ks[0], num_features, embedding_dim,
                       (num_features, embedding_dim))
    w1, b1 = linear(ks[1], input_dim, hidden_size)
    w2, b2 = linear(ks[2], hidden_size, hidden_size)
    w3, b3 = linear(ks[3], hidden_size, last_layer_dim)
    w4, b4 = linear(ks[4], embedding_dim + last_layer_dim, 1)
    # split fc4 weight: concat order in the reference is [hidden_fm, hidden_dnn]
    w4_fm = w4[:embedding_dim]             # [E, 1]
    w4_dnn = w4[embedding_dim:]            # [400, 1]

    return dict(emb_table=emb_table,
                w1=w1, b1=b1, w2=w2, b2=b2, w3=w3, b3=b3,
                w4_fm=w4_fm, w4_dnn=w4_dnn, b4=b4)


def prepare_kernel_params(params, num_fields_used, embedding_dim):
    """Pad hidden widths to multiples of 128, cast matmul weights to bf16, and
    build the lane-dense fc4 rows (with the FM 0.5 folded in)."""
    FE = num_fields_used * embedding_dim
    hidden_size = params["w1"].shape[1]
    last_layer_dim = params["w3"].shape[1]
    H1 = _round_up(hidden_size, 128)       # 400 -> 512
    H2 = _round_up(last_layer_dim, 128)    # 400 -> 512

    def pad2(a, rows, cols):
        return jnp.pad(a, ((0, rows - a.shape[0]), (0, cols - a.shape[1])))

    w4_fm_half = 0.5 * params["w4_fm"][:, 0]                         # [E]
    w4_ss_row = jnp.zeros((1, FE), jnp.float32).at[0, :embedding_dim].set(w4_fm_half)
    w4_sq_row = jnp.tile(w4_fm_half, num_fields_used)[None, :]       # [1, FE]

    return dict(
        emb_table=params["emb_table"],
        w1=pad2(params["w1"], FE, H1).astype(jnp.bfloat16),
        b1=pad2(params["b1"], 1, H1).astype(jnp.float32),
        w2=pad2(params["w2"], H1, H1).astype(jnp.bfloat16),
        b2=pad2(params["b2"], 1, H1).astype(jnp.float32),
        w3=pad2(params["w3"], H1, H2).astype(jnp.bfloat16),
        b3=pad2(params["b3"], 1, H2).astype(jnp.float32),
        w4_ss_row=w4_ss_row.astype(jnp.float32),                     # [1, FE]
        w4_sq_row=w4_sq_row.astype(jnp.float32),                     # [1, FE]
        w4_dnn_row=pad2(params["w4_dnn"].T, 1, H2).astype(jnp.float32),
        b4=params["b4"].astype(jnp.float32),                         # [1, 1]
    )


def _pick_tb(batch):
    """Batch tile: single tile for small batches (per-step overhead dominates),
    otherwise a multiple of 256 (MXU M dim) capped at 1024 with >= 2 grid steps
    so v7x's two TensorCores both get work."""
    b8 = _round_up(batch, 8)
    if b8 <= 256:
        return b8                          # single tile == full padded batch
    half = _round_up(batch, 512) // 2      # half of the 512-rounded batch
    return max(256, min(1024, half))


def _default_relu_bf16():
    # bf16 ReLU epilogue is a win on v6e/v7x (bf16 VALU); keep f32 on v5e.
    try:
        kind = jax.devices()[0].device_kind.lower()
    except Exception:
        return True
    return not any(tag in kind for tag in ("v5 lite", "v5e", "v5lite"))


@functools.partial(jax.jit, static_argnums=(3, 4))
def _deepfm_forward_impl(feature_ids, feature_vals, kparams, tb, relu_bf16):
    # drop the first field, exactly like the PyTorch forward
    ids = feature_ids[:, 1:]
    vals = feature_vals[:, 1:].astype(jnp.float32)
    B = ids.shape[0]
    B_pad = _round_up(B, tb)
    # output BlockSpec (1, tb) needs tb % 128 == 0 unless the block is the full array
    assert tb % 8 == 0 and (tb % 128 == 0 or tb == B_pad), (tb, B_pad)
    if B_pad != B:
        # pad the small id/val tensors BEFORE the gather so the big lane-dense
        # activation tensor is produced directly at its padded size (no extra
        # HBM read+write of a [B, F*E] copy).
        ids = jnp.pad(ids, ((0, B_pad - B), (0, 0)))
        vals = jnp.pad(vals, ((0, B_pad - B), (0, 0)))

    # embedding lookup (glue) -> [B_pad, F, E], scale by vals, flatten lane-dense
    emb = jnp.take(kparams["emb_table"], ids, axis=0) * vals[:, :, None]
    _, F, E = emb.shape
    FE = F * E
    flat = emb.reshape(B_pad, FE)
    grid = (B_pad // tb,)

    H1 = kparams["w1"].shape[1]
    H2 = kparams["w3"].shape[1]
    const = lambda i: (0, 0)               # weights stay VMEM-resident across steps

    kernel = functools.partial(deepfm_kernel, num_fields=F, embedding_dim=E,
                               relu_bf16=relu_bf16)
    out = pl.pallas_call(
        kernel,
        out_shape=jax.ShapeDtypeStruct((1, B_pad), jnp.float32),
        grid=grid,
        in_specs=[
            pl.BlockSpec((tb, FE), lambda i: (i, 0)),   # streamed activations
            pl.BlockSpec((FE, H1), const),              # w1 (resident)
            pl.BlockSpec((1, H1), const),               # b1
            pl.BlockSpec((H1, H1), const),              # w2
            pl.BlockSpec((1, H1), const),               # b2
            pl.BlockSpec((H1, H2), const),              # w3
            pl.BlockSpec((1, H2), const),               # b3
            pl.BlockSpec((1, FE), const),               # fc4 FM row (s*s term)
            pl.BlockSpec((1, FE), const),               # fc4 FM row (flat^2 term)
            pl.BlockSpec((1, H2), const),               # fc4 DNN row
            pl.BlockSpec(memory_space=pltpu.MemorySpace.SMEM),  # b4 scalar
        ],
        out_specs=pl.BlockSpec((1, tb), lambda i: (0, i)),      # lane-dense output
        compiler_params=pltpu.CompilerParams(
            dimension_semantics=("parallel",),          # shard batch over 2 TCs (v7x)
            vmem_limit_bytes=32 * 1024 * 1024),         # covers v5e at TB >= 1024
    )(flat, kparams["w1"], kparams["b1"], kparams["w2"], kparams["b2"],
      kparams["w3"], kparams["b3"], kparams["w4_ss_row"], kparams["w4_sq_row"],
      kparams["w4_dnn_row"], kparams["b4"])
    return out[0, :B]                       # squeeze(1) + drop batch padding


def deepfm_forward(feature_ids, feature_vals, kparams, *, tb=None, relu_bf16=None):
    if tb is None:
        tb = _pick_tb(int(feature_ids.shape[0]))
    if relu_bf16 is None:
        relu_bf16 = _default_relu_bf16()
    return _deepfm_forward_impl(feature_ids, feature_vals, kparams, int(tb),
                                bool(relu_bf16))


def deepfm_reference(feature_ids, feature_vals, params, match_kernel_bf16=False):
    """Pure-JAX reference mirroring the PyTorch forward.

    With match_kernel_bf16=True the fc1..fc3 matmuls use bf16 operands with f32
    accumulation, mirroring the kernel's MXU path."""
    ids = feature_ids[:, 1:]
    vals = feature_vals[:, 1:].astype(jnp.float32)
    emb = jnp.take(params["emb_table"], ids, axis=0) * vals[:, :, None]
    square_sum = jnp.sum(emb ** 2, axis=1)
    sum_square = jnp.sum(emb, axis=1) ** 2
    hidden_fm = (sum_square - square_sum) / 2
    flat = emb.reshape(emb.shape[0], -1)

    def dense(x, w, b):
        if match_kernel_bf16:
            acc = jnp.dot(x.astype(jnp.bfloat16), w.astype(jnp.bfloat16),
                          preferred_element_type=jnp.float32)
        else:
            acc = jnp.dot(x, w)
        return acc + b

    h = jax.nn.relu(dense(flat, params["w1"], params["b1"]))
    h = jax.nn.relu(dense(h, params["w2"], params["b2"]))
    hidden_dnn = jax.nn.relu(dense(h, params["w3"], params["b3"]))
    hidden_enc = jnp.concatenate([hidden_fm, hidden_dnn], axis=1)
    w4 = jnp.concatenate([params["w4_fm"], params["w4_dnn"]], axis=0)
    return (hidden_enc @ w4 + params["b4"])[:, 0]


if __name__ == "__main__":
    # small shapes consistent with the module
    batch = 8
    num_features = 100
    embedding_dim = 16
    num_fields = 9          # module uses num_fields - 1 = 8 fields
    hidden_size = 400       # default; last_layer_dim is hardcoded to 400

    key = jax.random.PRNGKey(0)
    k_params, k_ids, k_vals = jax.random.split(key, 3)
    params = init_params(k_params, num_features, embedding_dim, num_fields,
                         hidden_size=hidden_size)
    kparams = prepare_kernel_params(params, num_fields - 1, embedding_dim)

    feature_ids = jax.random.randint(k_ids, (batch, num_fields), 0, num_features,
                                     dtype=jnp.int32)
    feature_vals = jax.random.uniform(k_vals, (batch, num_fields), jnp.float32)

    pred = deepfm_forward(feature_ids, feature_vals, kparams)
    pred = jax.block_until_ready(pred)

    # correctness: exact-path check against a bf16-matmul reference, plus a
    # looser sanity check against the pure-f32 PyTorch-equivalent math
    ref_bf16 = deepfm_reference(feature_ids, feature_vals, params,
                                match_kernel_bf16=True)
    ref_f32 = deepfm_reference(feature_ids, feature_vals, params,
                               match_kernel_bf16=False)
    assert pred.shape == (batch,)
    assert jnp.allclose(pred, ref_bf16, atol=2e-3, rtol=2e-3), (pred, ref_bf16)
    assert jnp.allclose(pred, ref_f32, atol=5e-2, rtol=5e-2), (pred, ref_f32)

    # TODO(synk): FM roll-reduction assumes the flattened field*embed width maps
    # cleanly onto lanes (F*E here is 128); very unusual widths would need a
    # matmul-based field sum instead.
    print("KERNEL_OK")
</pallas_src>

<mosaic_0001>
module attributes {stable_mosaic.version = 11 : i64} {
  func.func @deepfm_kernel(%arg0: i32, %arg1: memref<8x128xf32, #tpu.memory_space<vmem>>, %arg2: memref<128x512xbf16, #tpu.memory_space<vmem>>, %arg3: memref<1x512xf32, #tpu.memory_space<vmem>>, %arg4: memref<512x512xbf16, #tpu.memory_space<vmem>>, %arg5: memref<1x512xf32, #tpu.memory_space<vmem>>, %arg6: memref<512x512xbf16, #tpu.memory_space<vmem>>, %arg7: memref<1x512xf32, #tpu.memory_space<vmem>>, %arg8: memref<1x128xf32, #tpu.memory_space<vmem>>, %arg9: memref<1x128xf32, #tpu.memory_space<vmem>>, %arg10: memref<1x512xf32, #tpu.memory_space<vmem>>, %arg11: memref<1x1xf32, #tpu.memory_space<smem>>, %arg12: memref<1x8xf32, #tpu.memory_space<vmem>>) attributes {dimension_semantics = [#tpu.dimension_semantics<parallel>], iteration_bounds = array<i64: 1>, scalar_prefetch = 0 : i64, scratch_operands = 0 : i64, tpu.core_type = #tpu.core_type<tc>, window_params = [{transform_indices = @transform_0, window_bounds = array<i64: 8, 128>}, {pipeline_mode = #tpu.pipeline_mode<synchronous>, transform_indices = @transform_1, window_bounds = array<i64: 128, 512>}, {pipeline_mode = #tpu.pipeline_mode<synchronous>, transform_indices = @transform_2, window_bounds = array<i64: 1, 512>}, {pipeline_mode = #tpu.pipeline_mode<synchronous>, transform_indices = @transform_3, window_bounds = array<i64: 512, 512>}, {pipeline_mode = #tpu.pipeline_mode<synchronous>, transform_indices = @transform_4, window_bounds = array<i64: 1, 512>}, {pipeline_mode = #tpu.pipeline_mode<synchronous>, transform_indices = @transform_5, window_bounds = array<i64: 512, 512>}, {pipeline_mode = #tpu.pipeline_mode<synchronous>, transform_indices = @transform_6, window_bounds = array<i64: 1, 512>}, {pipeline_mode = #tpu.pipeline_mode<synchronous>, transform_indices = @transform_7, window_bounds = array<i64: 1, 128>}, {pipeline_mode = #tpu.pipeline_mode<synchronous>, transform_indices = @transform_8, window_bounds = array<i64: 1, 128>}, {pipeline_mode = #tpu.pipeline_mode<synchronous>, transform_indices = @transform_9, window_bounds = array<i64: 1, 512>}, {transform_indices = @transform_10, window_bounds = array<i64: 1, 1>}, {transform_indices = @transform_11, window_bounds = array<i64: 1, 8>}]} {
    %c0 = arith.constant 0 : index
    %c0_0 = arith.constant 0 : index
    %0 = vector.load %arg1[%c0, %c0_0] : memref<8x128xf32, #tpu.memory_space<vmem>>, vector<8x128xf32>
    %c64_i32 = arith.constant 64 : i32
    %1 = tpu.dynamic_rotate %0 by %c64_i32 dim 1 : vector<8x128xf32>, i32 -> vector<8x128xf32>
    %2 = arith.addf %0, %1 : vector<8x128xf32>
    %c32_i32 = arith.constant 32 : i32
    %3 = tpu.dynamic_rotate %2 by %c32_i32 dim 1 : vector<8x128xf32>, i32 -> vector<8x128xf32>
    %4 = arith.addf %2, %3 : vector<8x128xf32>
    %c16_i32 = arith.constant 16 : i32
    %5 = tpu.dynamic_rotate %4 by %c16_i32 dim 1 : vector<8x128xf32>, i32 -> vector<8x128xf32>
    %6 = arith.addf %4, %5 : vector<8x128xf32>
    %7 = arith.mulf %6, %6 : vector<8x128xf32>
    %c0_1 = arith.constant 0 : index
    %c0_2 = arith.constant 0 : index
    %8 = vector.load %arg8[%c0_1, %c0_2] : memref<1x128xf32, #tpu.memory_space<vmem>>, vector<1x128xf32>
    %9 = vector.broadcast %8 : vector<1x128xf32> to vector<8x128xf32>
    %10 = arith.mulf %7, %9 : vector<8x128xf32>
    %11 = arith.mulf %0, %0 : vector<8x128xf32>
    %c0_3 = arith.constant 0 : index
    %c0_4 = arith.constant 0 : index
    %12 = vector.load %arg9[%c0_3, %c0_4] : memref<1x128xf32, #tpu.memory_space<vmem>>, vector<1x128xf32>
    %13 = vector.broadcast %12 : vector<1x128xf32> to vector<8x128xf32>
    %14 = arith.mulf %11, %13 : vector<8x128xf32>
    %15 = arith.subf %10, %14 : vector<8x128xf32>
    %cst = arith.constant dense<0.000000e+00> : vector<8xf32>
    %16 = vector.multi_reduction <add>, %15, %cst [1] : vector<8x128xf32> to vector<8xf32>
    %17 = arith.truncf %0 : vector<8x128xf32> to vector<8x128xbf16>
    %c0_5 = arith.constant 0 : index
    %c0_6 = arith.constant 0 : index
    %18 = vector.load %arg2[%c0_5, %c0_6] : memref<128x512xbf16, #tpu.memory_space<vmem>>, vector<128x512xbf16>
    %cst_7 = arith.constant dense<0.000000e+00> : vector<8x512xf32>
    %19 = tpu.matmul %17, %18, %cst_7 {dimension_numbers = #tpu.dot_dimension_numbers<[1], [0], [0], [1], [0, 0, 1, 1], [], []>} : vector<8x128xbf16>, vector<128x512xbf16>, vector<8x512xf32> -> vector<8x512xf32>
    %c0_8 = arith.constant 0 : index
    %c0_9 = arith.constant 0 : index
    %20 = vector.load %arg3[%c0_8, %c0_9] : memref<1x512xf32, #tpu.memory_space<vmem>>, vector<1x512xf32>
    %21 = vector.broadcast %20 : vector<1x512xf32> to vector<8x512xf32>
    %22 = arith.addf %19, %21 : vector<8x512xf32>
    %23 = arith.truncf %22 : vector<8x512xf32> to vector<8x512xbf16>
    %cst_10 = arith.constant 0.000000e+00 : bf16
    %24 = vector.broadcast %cst_10 : bf16 to vector<8x512xbf16>
    %25 = arith.maximumf %23, %24 : vector<8x512xbf16>
    %c0_11 = arith.constant 0 : index
    %c0_12 = arith.constant 0 : index
    %26 = vector.load %arg4[%c0_11, %c0_12] : memref<512x512xbf16, #tpu.memory_space<vmem>>, vector<512x512xbf16>
    %cst_13 = arith.constant dense<0.000000e+00> : vector<8x512xf32>
    %27 = tpu.matmul %25, %26, %cst_13 {dimension_numbers = #tpu.dot_dimension_numbers<[1], [0], [0], [1], [0, 0, 1, 1], [], []>} : vector<8x512xbf16>, vector<512x512xbf16>, vector<8x512xf32> -> vector<8x512xf32>
    %c0_14 = arith.constant 0 : index
    %c0_15 = arith.constant 0 : index
    %28 = vector.load %arg5[%c0_14, %c0_15] : memref<1x512xf32, #tpu.memory_space<vmem>>, vector<1x512xf32>
    %29 = vector.broadcast %28 : vector<1x512xf32> to vector<8x512xf32>
    %30 = arith.addf %27, %29 : vector<8x512xf32>
    %31 = arith.truncf %30 : vector<8x512xf32> to vector<8x512xbf16>
    %cst_16 = arith.constant 0.000000e+00 : bf16
    %32 = vector.broadcast %cst_16 : bf16 to vector<8x512xbf16>
    %33 = arith.maximumf %31, %32 : vector<8x512xbf16>
    %c0_17 = arith.constant 0 : index
    %c0_18 = arith.constant 0 : index
    %34 = vector.load %arg6[%c0_17, %c0_18] : memref<512x512xbf16, #tpu.memory_space<vmem>>, vector<512x512xbf16>
    %cst_19 = arith.constant dense<0.000000e+00> : vector<8x512xf32>
    %35 = tpu.matmul %33, %34, %cst_19 {dimension_numbers = #tpu.dot_dimension_numbers<[1], [0], [0], [1], [0, 0, 1, 1], [], []>} : vector<8x512xbf16>, vector<512x512xbf16>, vector<8x512xf32> -> vector<8x512xf32>
    %c0_20 = arith.constant 0 : index
    %c0_21 = arith.constant 0 : index
    %36 = vector.load %arg7[%c0_20, %c0_21] : memref<1x512xf32, #tpu.memory_space<vmem>>, vector<1x512xf32>
    %37 = vector.broadcast %36 : vector<1x512xf32> to vector<8x512xf32>
    %38 = arith.addf %35, %37 : vector<8x512xf32>
    %cst_22 = arith.constant 0.000000e+00 : f32
    %39 = vector.broadcast %cst_22 : f32 to vector<8x512xf32>
    %40 = arith.maximumf %38, %39 : vector<8x512xf32>
    %c0_23 = arith.constant 0 : index
    %c0_24 = arith.constant 0 : index
    %41 = vector.load %arg10[%c0_23, %c0_24] : memref<1x512xf32, #tpu.memory_space<vmem>>, vector<1x512xf32>
    %42 = vector.broadcast %41 : vector<1x512xf32> to vector<8x512xf32>
    %43 = arith.mulf %40, %42 : vector<8x512xf32>
    %cst_25 = arith.constant dense<0.000000e+00> : vector<8xf32>
    %44 = vector.multi_reduction <add>, %43, %cst_25 [1] : vector<8x512xf32> to vector<8xf32>
    %45 = arith.addf %16, %44 : vector<8xf32>
    %c0_26 = arith.constant 0 : index
    %c0_27 = arith.constant 0 : index
    %46 = memref.load %arg11[%c0_26, %c0_27] : memref<1x1xf32, #tpu.memory_space<smem>>
    %47 = vector.broadcast %46 : f32 to vector<8xf32>
    %48 = arith.addf %45, %47 : vector<8xf32>
    %49 = vector.shape_cast %48 : vector<8xf32> to vector<1x8xf32>
    %c0_28 = arith.constant 0 : index
    %c0_29 = arith.constant 0 : index
    %50 = vector.load %arg12[%c0_28, %c0_29] : memref<1x8xf32, #tpu.memory_space<vmem>>, vector<1x8xf32>
    tpu.vector_store %arg12[%c0_28, %c0_29], %49 {strides = array<i32>} : memref<1x8xf32, #tpu.memory_space<vmem>>, vector<1x8xf32>,
    return
  }
  func.func @transform_0(%arg0: i32) -> (i32, i32) {
    %c0_i32 = arith.constant 0 : i32
    %c0_i32_0 = arith.constant 0 : i32
    return %arg0, %c0_i32 : i32, i32
  }
  func.func @transform_1(%arg0: i32) -> (i32, i32) {
    %c0_i32 = arith.constant 0 : i32
    %c0_i32_0 = arith.constant 0 : i32
    %c0_i32_1 = arith.constant 0 : i32
    return %c0_i32, %c0_i32_0 : i32, i32
  }
  func.func @transform_2(%arg0: i32) -> (i32, i32) {
    %c0_i32 = arith.constant 0 : i32
    %c0_i32_0 = arith.constant 0 : i32
    %c0_i32_1 = arith.constant 0 : i32
    return %c0_i32, %c0_i32_0 : i32, i32
  }
  func.func @transform_3(%arg0: i32) -> (i32, i32) {
    %c0_i32 = arith.constant 0 : i32
    %c0_i32_0 = arith.constant 0 : i32
    %c0_i32_1 = arith.constant 0 : i32
    return %c0_i32, %c0_i32_0 : i32, i32
  }
  func.func @transform_4(%arg0: i32) -> (i32, i32) {
    %c0_i32 = arith.constant 0 : i32
    %c0_i32_0 = arith.constant 0 : i32
    %c0_i32_1 = arith.constant 0 : i32
    return %c0_i32, %c0_i32_0 : i32, i32
  }
  func.func @transform_5(%arg0: i32) -> (i32, i32) {
    %c0_i32 = arith.constant 0 : i32
    %c0_i32_0 = arith.constant 0 : i32
    %c0_i32_1 = arith.constant 0 : i32
    return %c0_i32, %c0_i32_0 : i32, i32
  }
  func.func @transform_6(%arg0: i32) -> (i32, i32) {
    %c0_i32 = arith.constant 0 : i32
    %c0_i32_0 = arith.constant 0 : i32
    %c0_i32_1 = arith.constant 0 : i32
    return %c0_i32, %c0_i32_0 : i32, i32
  }
  func.func @transform_7(%arg0: i32) -> (i32, i32) {
    %c0_i32 = arith.constant 0 : i32
    %c0_i32_0 = arith.constant 0 : i32
    %c0_i32_1 = arith.constant 0 : i32
    return %c0_i32, %c0_i32_0 : i32, i32
  }
  func.func @transform_8(%arg0: i32) -> (i32, i32) {
    %c0_i32 = arith.constant 0 : i32
    %c0_i32_0 = arith.constant 0 : i32
    %c0_i32_1 = arith.constant 0 : i32
    return %c0_i32, %c0_i32_0 : i32, i32
  }
  func.func @transform_9(%arg0: i32) -> (i32, i32) {
    %c0_i32 = arith.constant 0 : i32
    %c0_i32_0 = arith.constant 0 : i32
    %c0_i32_1 = arith.constant 0 : i32
    return %c0_i32, %c0_i32_0 : i32, i32
  }
  func.func @transform_10(%arg0: i32) -> (i32, i32) {
    %c0_i32 = arith.constant 0 : i32
    %c0_i32_0 = arith.constant 0 : i32
    %c0_i32_1 = arith.constant 0 : i32
    return %c0_i32, %c0_i32_0 : i32, i32
  }
  func.func @transform_11(%arg0: i32) -> (i32, i32) {
    %c0_i32 = arith.constant 0 : i32
    %c0_i32_0 = arith.constant 0 : i32
    return %c0_i32, %arg0 : i32, i32
  }
}

</mosaic_0001>

<bundles_post_ra>
// kernel: _deepfm_forward_impl.1
= control target key start
LH: loop header
LB: loop body
LE: loop exit
PB: predicated region body
PF: predicated region fallthrough
CT: control target
= control target key end

     0   :  { %17 = vsyncpa [#allocation4], 0  ;;  %s3518_s0 = inlined_call_operand.vmem [shape: f32[8,128], index: 0, kind: input, shape index: {}]   ;;  %s3519_s1 = inlined_call_operand.vmem [shape: bf16[128,512], index: 1, kind: input, shape index: {}]   ;;  %s3520_s2 = inlined_call_operand.vmem [shape: f32[1,512], index: 2, kind: input, shape index: {}]   ;;  %s3521_s3 = inlined_call_operand.hbm [shape: bf16[512,512], index: 3, kind: input, shape index: {}]   ;;  %s3522_s4 = inlined_call_operand.vmem [shape: f32[1,512], index: 4, kind: input, shape index: {}]   ;;  %s3523_s5 = inlined_call_operand.hbm [shape: bf16[512,512], index: 5, kind: input, shape index: {}]   ;;  %s3524_s6 = inlined_call_operand.vmem [shape: f32[1,512], index: 6, kind: input, shape index: {}]   ;;  %s3525_s7 = inlined_call_operand.vmem [shape: f32[1,128], index: 7, kind: input, shape index: {}]   ;;  %s3526_s8 = inlined_call_operand.vmem [shape: f32[1,128], index: 8, kind: input, shape index: {}]   ;;  %s3527_s9 = inlined_call_operand.vmem [shape: f32[1,512], index: 9, kind: input, shape index: {}]   ;;  %s3528_s10 = inlined_call_operand.<no memory space> [shape: f32[1,1], index: 10, kind: input, shape index: {}]   ;;  %s3529_s11 = inlined_call_operand.hbm [shape: f32[1,8], index: 11, kind: output, shape index: {}]  }
   0x1   :  { %18 = vsyncpa [#allocation7], 0 }
   0x2   :  { %19 = vsyncpa [#allocation5], 0  ;;  %s3213_s17 = smov [#allocation3]   ;;  %s3141_s21 = scalar_lea.hbm %s3521_s3, 16384 }
   0x3   :  { %s31_s18 = sshll.u32 %s3213_s17, 4  ;;  %p3142_p0 = scmp.ne.s32.totalorder %s3521_s3, %s3141_s21  ;;  %s32_s18 = int_to_ptr.vmem [resolvable:$true] %s31_s18 }
   0x4   :  { %p3145_p1 = scmp.lt.u32.totalorder %s3141_s21, %s3521_s3 }
   0x6   :  { %p3147_p2 = pnand %p3145_p1, %p3142_p0 }
   0x8   :  { %3150 = shalt.err (!%p3147_p2)
}
   0x9   :  { %s3151_s26 = scalar_lea.vmem %s32_s18, 16384  ;;  %p3156_p4 = scmp.lt.s32.totalorder %s32_s18, %s32_s18 }
   0xa   :  { %p3152_p3 = scmp.ne.s32.totalorder %s32_s18, %s3151_s26  ;;  %p3157_p5 = scmp.lt.s32.totalorder %s3151_s26, %s3151_s26 }
   0xc   :  { %p3158_p6 = por %p3157_p5, %p3156_p4 }
   0xe   :  { %p3159_p7 = pnand %p3158_p6, %p3152_p3 }
  0x10   :  { %3162 = shalt.err (!%p3159_p7)
}
  0x11   :  { %s3214_s27 = smov 256   ;;  %s3215_s28 = smov 16  }
  0x12   :  { %37 = dma.hbm_to_vmem [thread:$0]  %s3521_s3, 16384, %s32_s18, [#allocation4], %s3214_s27, %s3214_s27, %s3215_s28  }
  0x13   :  { %s3216_s12 = smov [#allocation6]   ;;  %s3163_s16 = scalar_lea.hbm %s3523_s5, 16384 }
  0x14   :  { %s45_s13 = sshll.u32 %s3216_s12, 4  ;;  %p3164_p8 = scmp.ne.s32.totalorder %s3523_s5, %s3163_s16  ;;  %s46_s13 = int_to_ptr.vmem [resolvable:$true] %s45_s13 }
  0x15   :  { %p3167_p9 = scmp.lt.u32.totalorder %s3163_s16, %s3523_s5 }
  0x17   :  { %p3169_p10 = pnand %p3167_p9, %p3164_p8 }
  0x19   :  { %3172 = shalt.err (!%p3169_p10)
}
  0x1a   :  { %s3173_s22 = scalar_lea.vmem %s46_s13, 16384  ;;  %p3178_p12 = scmp.lt.s32.totalorder %s46_s13, %s46_s13 }
  0x1b   :  { %p3174_p11 = scmp.ne.s32.totalorder %s46_s13, %s3173_s22  ;;  %p3179_p13 = scmp.lt.s32.totalorder %s3173_s22, %s3173_s22 }
  0x1d   :  { %p3180_p0 = por %p3179_p13, %p3178_p12 }
  0x1f   :  { %p3181_p1 = pnand %p3180_p0, %p3174_p11 }
  0x21   :  { %3184 = shalt.err (!%p3181_p1)
}
  0x22   :  { %51 = dma.hbm_to_vmem [thread:$0]  %s3523_s5, 16384, %s46_s13, [#allocation7], %s3214_s27, %s3214_s27, %s3215_s28  }
  0x23   :  { %3207 = dma.done.wait [#allocation4], 16384  }
  0x24   :  { %3208 = vsyncadd [#allocation4], 4294950912 }
  0x25   :  { %3209 = dma.done.wait [#allocation7], 16384  }
  0x26   :  { %3210 = vsyncadd [#allocation7], 4294950912  ;;  %v3217_v0 = vmov 0   ;;  %v2708_v1 = vld [vmem:[%s3519_s1 + $0x4] ss:$16 sps:$4 sm:$0xff]   ;;  %s3218_s25 = smov 64  }
  0x27   :  { %347 = vmatprep.mubr.bf16.mxu0 %v3217_v0  ;;  %388 = vmatprep.mubr.bf16.mxu1 %v3217_v0  ;;  %v2710_v2 = vld [vmem:[%s3519_s1] ss:$16 sps:$4 sm:$0xff]   ;;  %v2711_v3 = vld [vmem:[%s3519_s1 + $0x24] ss:$16 sps:$4 sm:$0xff]   ;;  %v2732_v11 = vld [vmem:[%s3519_s1 + $0xc] ss:$16 sps:$4 sm:$0xff]  }
  0x28   :  { %315 = vmatprep.subr.bf16.mxu0 %v2708_v1  ;;  %v2713_v4 = vld [vmem:[%s3519_s1 + $0x20] ss:$16 sps:$4 sm:$0xff]   ;;  %v2714_v5 = vld [vmem:[%s3519_s1 + $0x44] ss:$16 sps:$4 sm:$0xff]   ;;  %v2734_v12 = vld [vmem:[%s3519_s1 + $0x8] ss:$16 sps:$4 sm:$0xff]   ;;  %356 = vmatprep.subr.bf16.mxu1 %v2732_v11 }
  0x29   :  { %316 = vmatpush1.bf16.msra.mxu0 %v2710_v2  ;;  %v2716_v6 = vld [vmem:[%s3519_s1 + $0x40] ss:$16 sps:$4 sm:$0xff]   ;;  %v2717_v7 = vld [vmem:[%s3519_s1 + $0x64] ss:$16 sps:$4 sm:$0xff]   ;;  %v2735_v13 = vld [vmem:[%s3519_s1 + $0x2c] ss:$16 sps:$4 sm:$0xff]   ;;  %357 = vmatpush1.bf16.msra.mxu1 %v2734_v12 }
  0x2a   :  { %317 = vmatprep.subr.bf16.mxu0 %v2711_v3  ;;  %v2719_v8 = vld [vmem:[%s3519_s1 + $0x60] ss:$16 sps:$4 sm:$0xff]   ;;  %v2720_v9 = vld [vmem:[%s3519_s1 + $0x84] ss:$16 sps:$4 sm:$0xff]   ;;  %v2737_v15 = vld [vmem:[%s3519_s1 + $0x28] ss:$16 sps:$4 sm:$0xff]   ;;  %358 = vmatprep.subr.bf16.mxu1 %v2735_v13 }
  0x2b   :  { %v3339_v10 = vld [vmem:[%s3518_s0] sm:$0xff]  ;;  %v2738_v16 = vld [vmem:[%s3519_s1 + $0x4c] ss:$16 sps:$4 sm:$0xff]   ;;  %v2740_v19 = vld [vmem:[%s3519_s1 + $0x48] ss:$16 sps:$4 sm:$0xff]   ;;  %s3220_s20 = smov [#allocation8]  }
  0x2c   :  { %70 = vrot.lane.b32.xlu0 %v3339_v10, %s3218_s25  ;;  %v2722_v14 = vld [vmem:[%s3519_s1 + $0x80] ss:$16 sps:$4 sm:$0xff]   ;;  %v2723_v17 = vld [vmem:[%s3519_s1 + $0xa4] ss:$16 sps:$4 sm:$0xff]   ;;  %v2741_v20 = vld [vmem:[%s3519_s1 + $0x6c] ss:$16 sps:$4 sm:$0xff]   ;;  %v100_v30 = vpack.c.bf16 %v3339_v10, %v3339_v10 }
  0x2d   :  { %318 = vmatpush1.bf16.msra.mxu0 %v2713_v4  ;;  %v2725_v18 = vld [vmem:[%s3519_s1 + $0xa0] ss:$16 sps:$4 sm:$0xff]   ;;  %359 = vmatpush1.bf16.msra.mxu1 %v2737_v15  ;;  %v2726_v21 = vld [vmem:[%s3519_s1 + $0xc4] ss:$16 sps:$4 sm:$0xff]   ;;  %v2743_v23 = vld [vmem:[%s3519_s1 + $0x68] ss:$16 sps:$4 sm:$0xff]  }
  0x2e   :  { %319 = vmatprep.subr.bf16.mxu0 %v2714_v5  ;;  %360 = vmatprep.subr.bf16.mxu1 %v2738_v16  ;;  %v2728_v22 = vld [vmem:[%s3519_s1 + $0xc0] ss:$16 sps:$4 sm:$0xff]   ;;  %v2744_v24 = vld [vmem:[%s3519_s1 + $0x8c] ss:$16 sps:$4 sm:$0xff]   ;;  %v2729_v25 = vld [vmem:[%s3519_s1 + $0xe4] ss:$16 sps:$4 sm:$0xff]  }
  0x2f   :  { %v2731_v26 = vld [vmem:[%s3519_s1 + $0xe0] ss:$16 sps:$4 sm:$0xff]   ;;  %v2746_v27 = vld [vmem:[%s3519_s1 + $0x88] ss:$16 sps:$4 sm:$0xff]   ;;  %v2747_v28 = vld [vmem:[%s3519_s1 + $0xac] ss:$16 sps:$4 sm:$0xff]  }
  0x30   :  { %v2758_v29 = vld [vmem:[#allocation3 + $0x4] ss:$16 sps:$4 sm:$0xff]   ;;  %v2749_v31 = vld [vmem:[%s3519_s1 + $0xa8] ss:$16 sps:$4 sm:$0xff]   ;;  %v2750_v32 = vld [vmem:[%s3519_s1 + $0xcc] ss:$16 sps:$4 sm:$0xff]  }
  0x31   :  { %320 = vmatpush1.bf16.msra.mxu0 %v2716_v6  ;;  %361 = vmatpush1.bf16.msra.mxu1 %v2740_v19  ;;  %v2756_v33 = vld [vmem:[#allocation3] ss:$16 sps:$4 sm:$0xff]   ;;  %v2764_v34 = vld [vmem:[#allocation3 + $0x24] ss:$16 sps:$4 sm:$0xff]   ;;  %v2752_v35 = vld [vmem:[%s3519_s1 + $0xc8] ss:$16 sps:$4 sm:$0xff]  }
  0x32   :  { %321 = vmatprep.subr.bf16.mxu0 %v2717_v7  ;;  %362 = vmatprep.subr.bf16.mxu1 %v2741_v20  ;;  %v2753_v36 = vld [vmem:[%s3519_s1 + $0xec] ss:$16 sps:$4 sm:$0xff]   ;;  %v2762_v37 = vld [vmem:[#allocation3 + $0x20] ss:$16 sps:$4 sm:$0xff]   ;;  %v2770_v38 = vld [vmem:[#allocation3 + $0x44] ss:$16 sps:$4 sm:$0xff]  }
  0x33   :  { %v2755_v39 = vld [vmem:[%s3519_s1 + $0xe8] ss:$16 sps:$4 sm:$0xff]   ;;  %v2761_v40 = vld [vmem:[#allocation3 + $0xc] ss:$16 sps:$4 sm:$0xff]   ;;  %v2768_v41 = vld [vmem:[#allocation3 + $0x40] ss:$16 sps:$4 sm:$0xff]  }
  0x34   :  { %v2776_v42 = vld [vmem:[#allocation3 + $0x64] ss:$16 sps:$4 sm:$0xff]   ;;  %v2759_v43 = vld [vmem:[#allocation3 + $0x8] ss:$16 sps:$4 sm:$0xff]   ;;  %v2767_v44 = vld [vmem:[#allocation3 + $0x2c] ss:$16 sps:$4 sm:$0xff]  }
  0x35   :  { %322 = vmatpush1.bf16.msra.mxu0 %v2719_v8  ;;  %363 = vmatpush1.bf16.msra.mxu1 %v2743_v23  ;;  %v2774_v45 = vld [vmem:[#allocation3 + $0x60] ss:$16 sps:$4 sm:$0xff]   ;;  %v2782_v46 = vld [vmem:[#allocation3 + $0x84] ss:$16 sps:$4 sm:$0xff]   ;;  %v2765_v47 = vld [vmem:[#allocation3 + $0x28] ss:$16 sps:$4 sm:$0xff]  }
  0x36   :  { %323 = vmatprep.subr.bf16.mxu0 %v2720_v9  ;;  %364 = vmatprep.subr.bf16.mxu1 %v2744_v24  ;;  %v2773_v48 = vld [vmem:[#allocation3 + $0x4c] ss:$16 sps:$4 sm:$0xff]   ;;  %v2780_v49 = vld [vmem:[#allocation3 + $0x80] ss:$16 sps:$4 sm:$0xff]   ;;  %v2788_v50 = vld [vmem:[#allocation3 + $0xa4] ss:$16 sps:$4 sm:$0xff]  }
  0x37   :  { %v2771_v51 = vld [vmem:[#allocation3 + $0x48] ss:$16 sps:$4 sm:$0xff]   ;;  %v2779_v52 = vld [vmem:[#allocation3 + $0x6c] ss:$16 sps:$4 sm:$0xff]   ;;  %v2786_v53 = vld [vmem:[#allocation3 + $0xa0] ss:$16 sps:$4 sm:$0xff]  }
  0x38   :  { %v2794_v54 = vld [vmem:[#allocation3 + $0xc4] ss:$16 sps:$4 sm:$0xff]   ;;  %v2777_v55 = vld [vmem:[#allocation3 + $0x68] ss:$16 sps:$4 sm:$0xff]   ;;  %v2785_v56 = vld [vmem:[#allocation3 + $0x8c] ss:$16 sps:$4 sm:$0xff]  }
  0x39   :  { %324 = vmatpush1.bf16.msra.mxu0 %v2722_v14  ;;  %365 = vmatpush1.bf16.msra.mxu1 %v2746_v27  ;;  %v2792_v57 = vld [vmem:[#allocation3 + $0xc0] ss:$16 sps:$4 sm:$0xff]   ;;  %v2800_v58 = vld [vmem:[#allocation3 + $0xe4] ss:$16 sps:$4 sm:$0xff]   ;;  %v2783_v59 = vld [vmem:[#allocation3 + $0x88] ss:$16 sps:$4 sm:$0xff]  }
  0x3a   :  { %325 = vmatprep.subr.bf16.mxu0 %v2723_v17  ;;  %366 = vmatprep.subr.bf16.mxu1 %v2747_v28  ;;  %v2791_v60 = vld [vmem:[#allocation3 + $0xac] ss:$16 sps:$4 sm:$0xff]   ;;  %v2798_v61 = vld [vmem:[#allocation3 + $0xe0] ss:$16 sps:$4 sm:$0xff]   ;;  %v2806_v62 = vld [vmem:[#allocation3 + $0x104] ss:$16 sps:$4 sm:$0xff]  }
  0x3b   :  { %v2789_v63 = vld [vmem:[#allocation3 + $0xa8] ss:$16 sps:$4 sm:$0xff]   ;;  %v2797_v1 = vld [vmem:[#allocation3 + $0xcc] ss:$16 sps:$4 sm:$0xff]   ;;  %v2804_v2 = vld [vmem:[#allocation3 + $0x100] ss:$16 sps:$4 sm:$0xff]  }
  0x3c   :  { %v2812_v3 = vld [vmem:[#allocation3 + $0x124] ss:$16 sps:$4 sm:$0xff]   ;;  %v2795_v4 = vld [vmem:[#allocation3 + $0xc8] ss:$16 sps:$4 sm:$0xff]   ;;  %v2803_v5 = vld [vmem:[#allocation3 + $0xec] ss:$16 sps:$4 sm:$0xff]  }
  0x3d   :  { %326 = vmatpush1.bf16.msra.mxu0 %v2725_v18  ;;  %367 = vmatpush1.bf16.msra.mxu1 %v2749_v31  ;;  %v2810_v6 = vld [vmem:[#allocation3 + $0x120] ss:$16 sps:$4 sm:$0xff]   ;;  %v2818_v7 = vld [vmem:[#allocation3 + $0x144] ss:$16 sps:$4 sm:$0xff]   ;;  %v2801_v8 = vld [vmem:[#allocation3 + $0xe8] ss:$16 sps:$4 sm:$0xff]  }
  0x3e   :  { %327 = vmatprep.subr.bf16.mxu0 %v2726_v21  ;;  %368 = vmatprep.subr.bf16.mxu1 %v2750_v32  ;;  %v2809_v9 = vld [vmem:[#allocation3 + $0x10c] ss:$16 sps:$4 sm:$0xff]   ;;  %v2816_v11 = vld [vmem:[#allocation3 + $0x140] ss:$16 sps:$4 sm:$0xff]   ;;  %v2824_v12 = vld [vmem:[#allocation3 + $0x164] ss:$16 sps:$4 sm:$0xff]  }
  0x3f   :  { %v2807_v13 = vld [vmem:[#allocation3 + $0x108] ss:$16 sps:$4 sm:$0xff]   ;;  %v2815_v14 = vld [vmem:[#allocation3 + $0x12c] ss:$16 sps:$4 sm:$0xff]   ;;  %v2822_v15 = vld [vmem:[#allocation3 + $0x160] ss:$16 sps:$4 sm:$0xff]  }
  0x40   :  { %v2830_v16 = vld [vmem:[#allocation3 + $0x184] ss:$16 sps:$4 sm:$0xff]   ;;  %v2813_v17 = vld [vmem:[#allocation3 + $0x128] ss:$16 sps:$4 sm:$0xff]   ;;  %v2821_v18 = vld [vmem:[#allocation3 + $0x14c] ss:$16 sps:$4 sm:$0xff]  }
  0x41   :  { %328 = vmatpush1.bf16.msra.mxu0 %v2728_v22  ;;  %369 = vmatpush1.bf16.msra.mxu1 %v2752_v35  ;;  %v2828_v19 = vld [vmem:[#allocation3 + $0x180] ss:$16 sps:$4 sm:$0xff]   ;;  %v2836_v20 = vld [vmem:[#allocation3 + $0x1a4] ss:$16 sps:$4 sm:$0xff]   ;;  %v2819_v21 = vld [vmem:[#allocation3 + $0x148] ss:$16 sps:$4 sm:$0xff]  }
  0x42   :  { %329 = vmatprep.subr.bf16.mxu0 %v2729_v25  ;;  %370 = vmatprep.subr.bf16.mxu1 %v2753_v36  ;;  %v2827_v22 = vld [vmem:[#allocation3 + $0x16c] ss:$16 sps:$4 sm:$0xff]   ;;  %v2834_v23 = vld [vmem:[#allocation3 + $0x1a0] ss:$16 sps:$4 sm:$0xff]   ;;  %v2825_v24 = vld [vmem:[#allocation3 + $0x168] ss:$16 sps:$4 sm:$0xff]  }
  0x43   :  { %v2833_v25 = vld [vmem:[#allocation3 + $0x18c] ss:$16 sps:$4 sm:$0xff]   ;;  %v2837_v28 = vld [vmem:[#allocation3 + $0x1a8] ss:$16 sps:$4 sm:$0xff]   ;;  %v2840_v31 = vld [vmem:[#allocation3 + $0x1c0] ss:$16 sps:$4 sm:$0xff]  }
  0x44   :  { %v2839_v27 = vld [vmem:[#allocation3 + $0x1ac] ss:$16 sps:$4 sm:$0xff]   ;;  %v2843_v32 = vld [vmem:[#allocation3 + $0x1c8] ss:$16 sps:$4 sm:$0xff]   ;;  %v2846_v35 = vld [vmem:[#allocation3 + $0x1e0] ss:$16 sps:$4 sm:$0xff]  }
  0x45   :  { %330 = vmatpush1.bf16.msra.mxu0 %v2731_v26  ;;  %371 = vmatpush1.bf16.msra.mxu1 %v2755_v39  ;;  %v2831_v26 = vld [vmem:[#allocation3 + $0x188] ss:$16 sps:$4 sm:$0xff]   ;;  %s3219_s1 = smov 32   ;;  %s2376_s21 = sshll.u32 %s3220_s20, 4  ;;  %vm2368_vm0 = vcmask 57344   ;;  %s2377_s21 = int_to_ptr.vmem [resolvable:$true] %s2376_s21 }
  0x46   :  { %1195 = vmatprep.subr.bf16.mxu0 %v2758_v29  ;;  %1277 = vmatprep.subr.bf16.mxu1 %v2761_v40  ;;  %v2842_v29 = vld [vmem:[#allocation3 + $0x1c4] ss:$16 sps:$4 sm:$0xff]   ;;  %v2849_v36 = vld [vmem:[#allocation3 + $0x1e8] ss:$16 sps:$4 sm:$0xff]   ;;  %s3185_s22 = scalar_lea.vmem %s2377_s21, 16  ;;  %s3189_s3 = scalar_lea.vmem %s2377_s21, 32 }
  0x47   :  { %p3186_p2 = scmp.ne.s32.totalorder %s2377_s21, %s3185_s22  ;;  %p3190_p3 = scmp.lt.s32.totalorder %s2377_s21, %s2377_s21 }
  0x48   :  { %348 = vmatmul.mubr.bf16.vlgmr.msra.gmra.mrb[0].mxu0 %v100_v30  ;;  %389 = vmatmul.mubr.bf16.vlgmr.msra.gmra.mrb[0].mxu1 %v100_v30  ;;  %v2845_v30 = vld [vmem:[#allocation3 + $0x1cc] ss:$16 sps:$4 sm:$0xff]   ;;  %p3191_p4 = scmp.lt.s32.totalorder %s3189_s3, %s3185_s22 }
  0x49   :  { %1196 = vmatpush1.bf16.msra.mxu0 %v2756_v33  ;;  %1278 = vmatpush1.bf16.msra.mxu1 %v2759_v43  ;;  %v2848_v33 = vld [vmem:[#allocation3 + $0x1e4] ss:$16 sps:$4 sm:$0xff]  }
  0x4a   :  { %1197 = vmatprep.subr.bf16.mxu0 %v2764_v34  ;;  %1279 = vmatprep.subr.bf16.mxu1 %v2767_v44  ;;  %v2851_v34 = vld [vmem:[#allocation3 + $0x1ec] ss:$16 sps:$4 sm:$0xff]   ;;  %v3426_v44 = vld [vmem:[%s3520_s2] sm:$0xf]  ;;  %p3192_p5 = por %p3191_p4, %p3190_p3 }
  0x4c   :  { %p3193_p6 = pnand %p3192_p5, %p3186_p2 }
  0x4d   :  { %1198 = vmatpush1.bf16.msra.mxu0 %v2762_v37  ;;  %1280 = vmatpush1.bf16.msra.mxu1 %v2765_v47  ;;  %v2854_v37 = vld [vmem:[#allocation3 + $0x204] ss:$16 sps:$4 sm:$0xff]  }
  0x4e   :  { %1199 = vmatprep.subr.bf16.mxu0 %v2770_v38  ;;  %1281 = vmatprep.subr.bf16.mxu1 %v2773_v48  ;;  %v2857_v38 = vld [vmem:[#allocation3 + $0x20c] ss:$16 sps:$4 sm:$0xff]  }
  0x51   :  { %1200 = vmatpush1.bf16.msra.mxu0 %v2768_v41  ;;  %1282 = vmatpush1.bf16.msra.mxu1 %v2771_v51  ;;  %v135_v41 = vlaneseq }
  0x52   :  { %1201 = vmatprep.subr.bf16.mxu0 %v2776_v42  ;;  %1283 = vmatprep.subr.bf16.mxu1 %v2779_v52 }
  0x53   :  { %v3418_v42 = vshrl.u32 %v135_v41, 7 }
  0x55   :  { %1202 = vmatpush1.bf16.msra.mxu0 %v2774_v45  ;;  %1284 = vmatpush1.bf16.msra.mxu1 %v2777_v55  ;;  %v3421_v43 = vsub.s32 0, %v3418_v42  ;;  %v3429_v45 = vsub.s32 1, %v3418_v42  ;;  %v3436_v55 = vsub.s32 3, %v3418_v42 }
  0x56   :  { %1203 = vmatprep.subr.bf16.mxu0 %v2782_v46  ;;  %1285 = vmatprep.subr.bf16.mxu1 %v2785_v56 }
  0x57   :  { %v142_v46 = vrot.slane %v3426_v44, %v3429_v45 }
  0x59   :  { %1204 = vmatpush1.bf16.msra.mxu0 %v2780_v49  ;;  %1286 = vmatpush1.bf16.msra.mxu1 %v2783_v59 }
  0x5a   :  { %1205 = vmatprep.subr.bf16.mxu0 %v2788_v50  ;;  %1287 = vmatprep.subr.bf16.mxu1 %v2791_v60  ;;  %v2860_v60 = vld [vmem:[#allocation3 + $0x224] ss:$16 sps:$4 sm:$0xff]  }
  0x5d   :  { %1206 = vmatpush1.bf16.msra.mxu0 %v2786_v53  ;;  %1288 = vmatpush1.bf16.msra.mxu1 %v2789_v63  ;;  %v2858_v63 = vld [vmem:[#allocation3 + $0x220] ss:$16 sps:$4 sm:$0xff]  }
  0x5e   :  { %1207 = vmatprep.subr.bf16.mxu0 %v2794_v54  ;;  %1289 = vmatprep.subr.bf16.mxu1 %v2797_v1  ;;  %v2861_v1 = vld [vmem:[#allocation3 + $0x228] ss:$16 sps:$4 sm:$0xff]  }
  0x61   :  { %1208 = vmatpush1.bf16.msra.mxu0 %v2792_v57  ;;  %1290 = vmatpush1.bf16.msra.mxu1 %v2795_v4  ;;  %v2852_v57 = vld [vmem:[#allocation3 + $0x200] ss:$16 sps:$4 sm:$0xff]  }
  0x62   :  { %1209 = vmatprep.subr.bf16.mxu0 %v2800_v58  ;;  %1291 = vmatprep.subr.bf16.mxu1 %v2803_v5  ;;  %v2855_v58 = vld [vmem:[#allocation3 + $0x208] ss:$16 sps:$4 sm:$0xff]  }
  0x65   :  { %1210 = vmatpush1.bf16.msra.mxu0 %v2798_v61  ;;  %1292 = vmatpush1.bf16.msra.mxu1 %v2801_v8  ;;  %v2863_v61 = vld [vmem:[#allocation3 + $0x22c] ss:$16 sps:$4 sm:$0xff]   ;;  %v2864_v8 = vld [vmem:[#allocation3 + $0x240] ss:$16 sps:$4 sm:$0xff]  }
  0x66   :  { %1211 = vmatprep.subr.bf16.mxu0 %v2806_v62  ;;  %1293 = vmatprep.subr.bf16.mxu1 %v2809_v9  ;;  %v150_v62 = vrot.slane %v3426_v44, %v3436_v55  ;;  %v2867_v9 = vld [vmem:[#allocation3 + $0x248] ss:$16 sps:$4 sm:$0xff]  }
  0x69   :  { %1212 = vmatpush1.bf16.msra.mxu0 %v2804_v2  ;;  %1294 = vmatpush1.bf16.msra.mxu1 %v2807_v13  ;;  %v2866_v2 = vld [vmem:[#allocation3 + $0x244] ss:$16 sps:$4 sm:$0xff]   ;;  %v2875_v13 = vld [vmem:[#allocation3 + $0x26c] ss:$16 sps:$4 sm:$0xff]  }
  0x6a   :  { %1213 = vmatprep.subr.bf16.mxu0 %v2812_v3  ;;  %1295 = vmatprep.subr.bf16.mxu1 %v2815_v14  ;;  %v2869_v3 = vld [vmem:[#allocation3 + $0x24c] ss:$16 sps:$4 sm:$0xff]  }
  0x6d   :  { %1214 = vmatpush1.bf16.msra.mxu0 %v2810_v6  ;;  %1296 = vmatpush1.bf16.msra.mxu1 %v2813_v17  ;;  %v2873_v17 = vld [vmem:[#allocation3 + $0x268] ss:$16 sps:$4 sm:$0xff]  }
  0x6e   :  { %1215 = vmatprep.subr.bf16.mxu0 %v2818_v7  ;;  %1297 = vmatprep.subr.bf16.mxu1 %v2821_v18  ;;  %v2878_v18 = vld [vmem:[#allocation3 + $0x284] ss:$16 sps:$4 sm:$0xff]  }
  0x71   :  { %1216 = vmatpush1.bf16.msra.mxu0 %v2816_v11  ;;  %1298 = vmatpush1.bf16.msra.mxu1 %v2819_v21  ;;  %v2879_v21 = vld [vmem:[#allocation3 + $0x288] ss:$16 sps:$4 sm:$0xff]  }
  0x72   :  { %1217 = vmatprep.subr.bf16.mxu0 %v2824_v12  ;;  %1299 = vmatprep.subr.bf16.mxu1 %v2827_v22  ;;  %v2872_v12 = vld [vmem:[#allocation3 + $0x264] ss:$16 sps:$4 sm:$0xff]  }
  0x73   :  { %v2884_v22 = vld [vmem:[#allocation3 + $0x2a4] ss:$16 sps:$4 sm:$0xff]  }
  0x75   :  { %1218 = vmatpush1.bf16.msra.mxu0 %v2822_v15  ;;  %1300 = vmatpush1.bf16.msra.mxu1 %v2825_v24  ;;  %v2882_v24 = vld [vmem:[#allocation3 + $0x2a0] ss:$16 sps:$4 sm:$0xff]  }
  0x76   :  { %1219 = vmatprep.subr.bf16.mxu0 %v2830_v16  ;;  %1301 = vmatprep.subr.bf16.mxu1 %v2833_v25  ;;  %v2870_v16 = vld [vmem:[#allocation3 + $0x260] ss:$16 sps:$4 sm:$0xff]   ;;  %v2885_v25 = vld [vmem:[#allocation3 + $0x2a8] ss:$16 sps:$4 sm:$0xff]  }
  0x79   :  { %1220 = vmatpush1.bf16.msra.mxu0 %v2828_v19  ;;  %1302 = vmatpush1.bf16.msra.mxu1 %v2831_v26  ;;  %v2881_v19 = vld [vmem:[#allocation3 + $0x28c] ss:$16 sps:$4 sm:$0xff]   ;;  %v2890_v26 = vld [vmem:[#allocation3 + $0x2c4] ss:$16 sps:$4 sm:$0xff]  }
  0x7a   :  { %1221 = vmatprep.subr.bf16.mxu0 %v2836_v20  ;;  %1303 = vmatprep.subr.bf16.mxu1 %v2839_v27  ;;  %v2876_v20 = vld [vmem:[#allocation3 + $0x280] ss:$16 sps:$4 sm:$0xff]   ;;  %v2893_v27 = vld [vmem:[#allocation3 + $0x2cc] ss:$16 sps:$4 sm:$0xff]  }
  0x7d   :  { %1222 = vmatpush1.bf16.msra.mxu0 %v2834_v23  ;;  %1304 = vmatpush1.bf16.msra.mxu1 %v2837_v28  ;;  %v2887_v23 = vld [vmem:[#allocation3 + $0x2ac] ss:$16 sps:$4 sm:$0xff]   ;;  %v2888_v28 = vld [vmem:[#allocation3 + $0x2c0] ss:$16 sps:$4 sm:$0xff]  }
  0x7e   :  { %1223 = vmatprep.subr.bf16.mxu0 %v2842_v29  ;;  %1305 = vmatprep.subr.bf16.mxu1 %v2845_v30  ;;  %v2891_v29 = vld [vmem:[#allocation3 + $0x2c8] ss:$16 sps:$4 sm:$0xff]   ;;  %v2896_v30 = vld [vmem:[#allocation3 + $0x2e4] ss:$16 sps:$4 sm:$0xff]  }
  0x81   :  { %1224 = vmatpush1.bf16.msra.mxu0 %v2840_v31  ;;  %1306 = vmatpush1.bf16.msra.mxu1 %v2843_v32  ;;  %v2899_v31 = vld [vmem:[#allocation3 + $0x2ec] ss:$16 sps:$4 sm:$0xff]   ;;  %v2894_v32 = vld [vmem:[#allocation3 + $0x2e0] ss:$16 sps:$4 sm:$0xff]  }
  0x82   :  { %1225 = vmatprep.subr.bf16.mxu0 %v2848_v33  ;;  %1307 = vmatprep.subr.bf16.mxu1 %v2851_v34  ;;  %v2897_v33 = vld [vmem:[#allocation3 + $0x2e8] ss:$16 sps:$4 sm:$0xff]   ;;  %v2902_v34 = vld [vmem:[#allocation3 + $0x304] ss:$16 sps:$4 sm:$0xff]  }
  0x85   :  { %1226 = vmatpush1.bf16.msra.mxu0 %v2846_v35  ;;  %1308 = vmatpush1.bf16.msra.mxu1 %v2849_v36  ;;  %v2905_v35 = vld [vmem:[#allocation3 + $0x30c] ss:$16 sps:$4 sm:$0xff]   ;;  %v2900_v36 = vld [vmem:[#allocation3 + $0x300] ss:$16 sps:$4 sm:$0xff]  }
  0x86   :  { %1236 = vmatprep.subr.bf16.mxu0 %v2854_v37  ;;  %1318 = vmatprep.subr.bf16.mxu1 %v2857_v38  ;;  %v2903_v37 = vld [vmem:[#allocation3 + $0x308] ss:$16 sps:$4 sm:$0xff]   ;;  %v2908_v38 = vld [vmem:[#allocation3 + $0x324] ss:$16 sps:$4 sm:$0xff]  }
  0x9e   :  { %v71_v39 = vpop.permute.xlu0 %70 }
  0x9f   :  { %v3414_v40 = vadd.f32 %v71_v39, %v3339_v10  ;;  %v138_v10 = vrot.slane %v3426_v44, %v3421_v43  ;;  %v2911_v39 = vld [vmem:[#allocation3 + $0x32c] ss:$16 sps:$4 sm:$0xff]  }
  0xa1   :  { %73 = vrot.lane.b32.xlu0 %v3414_v40, %s3219_s1 }
 0x11b   :  { %v349_v47 = vpop.f32.mrb[0].mxu0  ;;  %v3442_v4 = vpop.f32.mrb[0].mxu1 }
 0x11c   :  { %v350_v48 = vadd.f32 %v349_v47, %v138_v10  ;;  %v351_v49 = vpop.f32.mrb[1].mxu0  ;;  %v392_v5 = vpop.f32.mrb[1].mxu1  ;;  %v2906_v10 = vld [vmem:[#allocation3 + $0x320] ss:$16 sps:$4 sm:$0xff]   ;;  %v2914_v47 = vld [vmem:[#allocation3 + $0x344] ss:$16 sps:$4 sm:$0xff]  }
 0x11d   :  { %v352_v50 = vadd.f32 %v351_v49, %v142_v46  ;;  %v353_v51 = vpop.f32.mrb[2].mxu0  ;;  %v393_v6 = vadd.f32 %v392_v5, %v150_v62  ;;  %v394_v7 = vpop.f32.mrb[2].mxu1  ;;  %v2909_v46 = vld [vmem:[#allocation3 + $0x328] ss:$16 sps:$4 sm:$0xff]   ;;  %v2912_v49 = vld [vmem:[#allocation3 + $0x340] ss:$16 sps:$4 sm:$0xff]  }
 0x11e   :  { %v397_v52 = vpack.c.bf16 %v350_v48, %v350_v48  ;;  %v354_v53 = vpop.f32.mrb[3].mxu0  ;;  %v395_v11 = vpop.f32.mrb[3].mxu1  ;;  %v2917_v48 = vld [vmem:[#allocation3 + $0x34c] ss:$16 sps:$4 sm:$0xff]   ;;  %v2920_v51 = vld [vmem:[#allocation3 + $0x364] ss:$16 sps:$4 sm:$0xff]  }
 0x11f   :  { %v398_v54 = vpack.c.bf16 %v352_v50, %v352_v50  ;;  %v400_v14 = vpack.c.bf16 %v393_v6, %v393_v6  ;;  %v2915_v50 = vld [vmem:[#allocation3 + $0x348] ss:$16 sps:$4 sm:$0xff]   ;;  %v2918_v53 = vld [vmem:[#allocation3 + $0x360] ss:$16 sps:$4 sm:$0xff]   ;;  %v2935_v62 = vld [vmem:[#allocation3 + $0x3ac] ss:$16 sps:$4 sm:$0xff]  }
 0x120   :  { %v401_v59 = vmax.bf16 %v3217_v0, %v397_v52  ;;  %v2923_v52 = vld [vmem:[#allocation3 + $0x36c] ss:$16 sps:$4 sm:$0xff]   ;;  %v2936_v6 = vld [vmem:[#allocation3 + $0x3c0] ss:$16 sps:$4 sm:$0xff]   ;;  %v2939_v7 = vld [vmem:[#allocation3 + $0x3c8] ss:$16 sps:$4 sm:$0xff]  }
 0x121   :  { %v402_v56 = vmax.bf16 %v3217_v0, %v398_v54  ;;  %v404_v15 = vmax.bf16 %v3217_v0, %v400_v14  ;;  %v2921_v54 = vld [vmem:[#allocation3 + $0x368] ss:$16 sps:$4 sm:$0xff]   ;;  %v2941_v5 = vld [vmem:[#allocation3 + $0x3cc] ss:$16 sps:$4 sm:$0xff]   ;;  %v2944_v11 = vld [vmem:[#allocation3 + $0x3e4] ss:$16 sps:$4 sm:$0xff]  }
 0x122   :  { %v2945_v14 = vld [vmem:[#allocation3 + $0x3e8] ss:$16 sps:$4 sm:$0xff]  }
 0x123   :  { %1227 = vmatprep.mubr.bf16.mxu0 %v402_v56  ;;  %1309 = vmatprep.mubr.bf16.mxu1 %v402_v56  ;;  %v2926_v56 = vld [vmem:[#allocation3 + $0x384] ss:$16 sps:$4 sm:$0xff]  }
 0x124   :  { %1228 = vmatmul.mubr.bf16.vlgmr.msra.gmra.mrb[4].mxu0 %v401_v59  ;;  %1310 = vmatmul.mubr.bf16.vlgmr.msra.gmra.mrb[4].mxu1 %v401_v59  ;;  %v2927_v59 = vld [vmem:[#allocation3 + $0x388] ss:$16 sps:$4 sm:$0xff]  }
 0x125   :  { %1237 = vmatpush1.bf16.msra.mxu0 %v2852_v57  ;;  %1319 = vmatpush1.bf16.msra.mxu1 %v2855_v58  ;;  %v2929_v57 = vld [vmem:[#allocation3 + $0x38c] ss:$16 sps:$4 sm:$0xff]   ;;  %v2924_v58 = vld [vmem:[#allocation3 + $0x380] ss:$16 sps:$4 sm:$0xff]  }
 0x126   :  { %1238 = vmatprep.subr.bf16.mxu0 %v2860_v60  ;;  %1320 = vmatprep.subr.bf16.mxu1 %v2863_v61  ;;  %v3446_v60 = vsub.s32 2, %v3418_v42  ;;  %v2932_v61 = vld [vmem:[#allocation3 + $0x3a4] ss:$16 sps:$4 sm:$0xff]  }
 0x127   :  { %1268 = vmatprep.mubr.bf16.mxu0 %v404_v15  ;;  %1350 = vmatprep.mubr.bf16.mxu1 %v404_v15 }
 0x129   :  { %1239 = vmatpush1.bf16.msra.mxu0 %v2858_v63  ;;  %1321 = vmatpush1.bf16.msra.mxu1 %v2861_v1  ;;  %v2930_v63 = vld [vmem:[#allocation3 + $0x3a0] ss:$16 sps:$4 sm:$0xff]   ;;  %v2933_v1 = vld [vmem:[#allocation3 + $0x3a8] ss:$16 sps:$4 sm:$0xff]  }
 0x12a   :  { %1240 = vmatprep.subr.bf16.mxu0 %v2866_v2  ;;  %1322 = vmatprep.subr.bf16.mxu1 %v2869_v3  ;;  %v146_v2 = vrot.slane %v3426_v44, %v3446_v60  ;;  %v2938_v3 = vld [vmem:[#allocation3 + $0x3c4] ss:$16 sps:$4 sm:$0xff]   ;;  %v2942_v44 = vld [vmem:[#allocation3 + $0x3e0] ss:$16 sps:$4 sm:$0xff]  }
 0x12d   :  { %1241 = vmatpush1.bf16.msra.mxu0 %v2864_v8  ;;  %1323 = vmatpush1.bf16.msra.mxu1 %v2867_v9  ;;  %v74_v8 = vpop.permute.xlu0 %73  ;;  %v391_v9 = vadd.f32 %v3442_v4, %v146_v2  ;;  %v2948_v4 = vld [vmem:[#allocation6] ss:$16 sps:$4 sm:$0xff]   ;;  %v3011_v2 = vld [vmem:[#allocation6 + $0x148] ss:$16 sps:$4 sm:$0xff]  }
 0x12e   :  { %1242 = vmatprep.subr.bf16.mxu0 %v2872_v12  ;;  %1324 = vmatprep.subr.bf16.mxu1 %v2875_v13  ;;  %v2947_v12 = vld [vmem:[#allocation3 + $0x3ec] ss:$16 sps:$4 sm:$0xff]   ;;  %v3452_v13 = vadd.f32 %v74_v8, %v3414_v40  ;;  %v2956_v40 = vld [vmem:[#allocation6 + $0x24] ss:$16 sps:$4 sm:$0xff]  }
 0x12f   :  { %v399_v15 = vpack.c.bf16 %v391_v9, %v391_v9  ;;  %v3022_v8 = vld [vmem:[#allocation6 + $0x184] ss:$16 sps:$4 sm:$0xff]   ;;  %v3025_v9 = vld [vmem:[#allocation6 + $0x18c] ss:$16 sps:$4 sm:$0xff]  }
 0x130   :  { %76 = vrot.lane.b32.xlu1 %v3452_v13, %s3215_s28 }
 0x131   :  { %1243 = vmatpush1.bf16.msra.mxu0 %v2870_v16  ;;  %1325 = vmatpush1.bf16.msra.mxu1 %v2873_v17  ;;  %v2950_v16 = vld [vmem:[#allocation6 + $0x4] ss:$16 sps:$4 sm:$0xff]   ;;  %v2953_v17 = vld [vmem:[#allocation6 + $0xc] ss:$16 sps:$4 sm:$0xff]  }
 0x132   :  { %1244 = vmatprep.subr.bf16.mxu0 %v2878_v18  ;;  %1326 = vmatprep.subr.bf16.mxu1 %v2881_v19  ;;  %v2951_v18 = vld [vmem:[#allocation6 + $0x8] ss:$16 sps:$4 sm:$0xff]   ;;  %v403_v19 = vmax.bf16 %v3217_v0, %v399_v15  ;;  %v3026_v15 = vld [vmem:[#allocation6 + $0x1a0] ss:$16 sps:$4 sm:$0xff]  }
 0x135   :  { %1245 = vmatpush1.bf16.msra.mxu0 %v2876_v20  ;;  %1327 = vmatpush1.bf16.msra.mxu1 %v2879_v21  ;;  %v2959_v20 = vld [vmem:[#allocation6 + $0x2c] ss:$16 sps:$4 sm:$0xff]   ;;  %v2954_v21 = vld [vmem:[#allocation6 + $0x20] ss:$16 sps:$4 sm:$0xff]  }
 0x136   :  { %1246 = vmatprep.subr.bf16.mxu0 %v2884_v22  ;;  %1328 = vmatprep.subr.bf16.mxu1 %v2887_v23  ;;  %v2957_v22 = vld [vmem:[#allocation6 + $0x28] ss:$16 sps:$4 sm:$0xff]   ;;  %v2962_v23 = vld [vmem:[#allocation6 + $0x44] ss:$16 sps:$4 sm:$0xff]  }
 0x139   :  { %1247 = vmatpush1.bf16.msra.mxu0 %v2882_v24  ;;  %1329 = vmatpush1.bf16.msra.mxu1 %v2885_v25  ;;  %v2965_v24 = vld [vmem:[#allocation6 + $0x4c] ss:$16 sps:$4 sm:$0xff]   ;;  %v2960_v25 = vld [vmem:[#allocation6 + $0x40] ss:$16 sps:$4 sm:$0xff]  }
 0x13a   :  { %1248 = vmatprep.subr.bf16.mxu0 %v2890_v26  ;;  %1330 = vmatprep.subr.bf16.mxu1 %v2893_v27  ;;  %v2963_v26 = vld [vmem:[#allocation6 + $0x48] ss:$16 sps:$4 sm:$0xff]   ;;  %v2968_v27 = vld [vmem:[#allocation6 + $0x64] ss:$16 sps:$4 sm:$0xff]  }
 0x13d   :  { %1249 = vmatpush1.bf16.msra.mxu0 %v2888_v28  ;;  %1331 = vmatpush1.bf16.msra.mxu1 %v2891_v29  ;;  %v2971_v28 = vld [vmem:[#allocation6 + $0x6c] ss:$16 sps:$4 sm:$0xff]   ;;  %v2966_v29 = vld [vmem:[#allocation6 + $0x60] ss:$16 sps:$4 sm:$0xff]  }
 0x13e   :  { %1250 = vmatprep.subr.bf16.mxu0 %v2896_v30  ;;  %1332 = vmatprep.subr.bf16.mxu1 %v2899_v31  ;;  %v2969_v30 = vld [vmem:[#allocation6 + $0x68] ss:$16 sps:$4 sm:$0xff]   ;;  %v2974_v31 = vld [vmem:[#allocation6 + $0x84] ss:$16 sps:$4 sm:$0xff]  }
 0x141   :  { %1251 = vmatpush1.bf16.msra.mxu0 %v2894_v32  ;;  %1333 = vmatpush1.bf16.msra.mxu1 %v2897_v33  ;;  %v2977_v32 = vld [vmem:[#allocation6 + $0x8c] ss:$16 sps:$4 sm:$0xff]   ;;  %v2972_v33 = vld [vmem:[#allocation6 + $0x80] ss:$16 sps:$4 sm:$0xff]  }
 0x142   :  { %1252 = vmatprep.subr.bf16.mxu0 %v2902_v34  ;;  %1334 = vmatprep.subr.bf16.mxu1 %v2905_v35  ;;  %v2975_v34 = vld [vmem:[#allocation6 + $0x88] ss:$16 sps:$4 sm:$0xff]   ;;  %v2980_v35 = vld [vmem:[#allocation6 + $0xa4] ss:$16 sps:$4 sm:$0xff]  }
 0x145   :  { %1253 = vmatpush1.bf16.msra.mxu0 %v2900_v36  ;;  %1335 = vmatpush1.bf16.msra.mxu1 %v2903_v37  ;;  %v2983_v36 = vld [vmem:[#allocation6 + $0xac] ss:$16 sps:$4 sm:$0xff]   ;;  %v2978_v37 = vld [vmem:[#allocation6 + $0xa0] ss:$16 sps:$4 sm:$0xff]  }
 0x146   :  { %1254 = vmatprep.subr.bf16.mxu0 %v2908_v38  ;;  %1336 = vmatprep.subr.bf16.mxu1 %v2911_v39  ;;  %v2981_v38 = vld [vmem:[#allocation6 + $0xa8] ss:$16 sps:$4 sm:$0xff]   ;;  %v2986_v39 = vld [vmem:[#allocation6 + $0xc4] ss:$16 sps:$4 sm:$0xff]  }
 0x149   :  { %1255 = vmatpush1.bf16.msra.mxu0 %v2906_v10  ;;  %1337 = vmatpush1.bf16.msra.mxu1 %v2909_v46  ;;  %v2989_v10 = vld [vmem:[#allocation6 + $0xcc] ss:$16 sps:$4 sm:$0xff]   ;;  %v2984_v46 = vld [vmem:[#allocation6 + $0xc0] ss:$16 sps:$4 sm:$0xff]  }
 0x14a   :  { %1256 = vmatprep.subr.bf16.mxu0 %v2914_v47  ;;  %1338 = vmatprep.subr.bf16.mxu1 %v2917_v48  ;;  %v2987_v47 = vld [vmem:[#allocation6 + $0xc8] ss:$16 sps:$4 sm:$0xff]   ;;  %v2992_v48 = vld [vmem:[#allocation6 + $0xe4] ss:$16 sps:$4 sm:$0xff]  }
 0x14d   :  { %1257 = vmatpush1.bf16.msra.mxu0 %v2912_v49  ;;  %1339 = vmatpush1.bf16.msra.mxu1 %v2915_v50  ;;  %v2995_v49 = vld [vmem:[#allocation6 + $0xec] ss:$16 sps:$4 sm:$0xff]   ;;  %v2990_v50 = vld [vmem:[#allocation6 + $0xe0] ss:$16 sps:$4 sm:$0xff]  }
 0x14e   :  { %1258 = vmatprep.subr.bf16.mxu0 %v2920_v51  ;;  %1340 = vmatprep.subr.bf16.mxu1 %v2923_v52  ;;  %v2993_v51 = vld [vmem:[#allocation6 + $0xe8] ss:$16 sps:$4 sm:$0xff]   ;;  %v2998_v52 = vld [vmem:[#allocation6 + $0x104] ss:$16 sps:$4 sm:$0xff]  }
 0x151   :  { %1259 = vmatpush1.bf16.msra.mxu0 %v2918_v53  ;;  %1341 = vmatpush1.bf16.msra.mxu1 %v2921_v54  ;;  %v3001_v53 = vld [vmem:[#allocation6 + $0x10c] ss:$16 sps:$4 sm:$0xff]   ;;  %v2996_v54 = vld [vmem:[#allocation6 + $0x100] ss:$16 sps:$4 sm:$0xff]  }
 0x152   :  { %1260 = vmatprep.subr.bf16.mxu0 %v2926_v56  ;;  %1342 = vmatprep.subr.bf16.mxu1 %v2929_v57  ;;  %v2999_v56 = vld [vmem:[#allocation6 + $0x108] ss:$16 sps:$4 sm:$0xff]   ;;  %v3004_v57 = vld [vmem:[#allocation6 + $0x124] ss:$16 sps:$4 sm:$0xff]  }
 0x155   :  { %1261 = vmatpush1.bf16.msra.mxu0 %v2924_v58  ;;  %1343 = vmatpush1.bf16.msra.mxu1 %v2927_v59  ;;  %v3007_v58 = vld [vmem:[#allocation6 + $0x12c] ss:$16 sps:$4 sm:$0xff]   ;;  %v3002_v59 = vld [vmem:[#allocation6 + $0x120] ss:$16 sps:$4 sm:$0xff]  }
 0x156   :  { %1262 = vmatprep.subr.bf16.mxu0 %v2932_v61  ;;  %1344 = vmatprep.subr.bf16.mxu1 %v2935_v62  ;;  %v3005_v61 = vld [vmem:[#allocation6 + $0x128] ss:$16 sps:$4 sm:$0xff]   ;;  %v3010_v62 = vld [vmem:[#allocation6 + $0x144] ss:$16 sps:$4 sm:$0xff]  }
 0x159   :  { %1263 = vmatpush1.bf16.msra.mxu0 %v2930_v63  ;;  %1345 = vmatpush1.bf16.msra.mxu1 %v2933_v1  ;;  %v3013_v63 = vld [vmem:[#allocation6 + $0x14c] ss:$16 sps:$4 sm:$0xff]   ;;  %v3008_v1 = vld [vmem:[#allocation6 + $0x140] ss:$16 sps:$4 sm:$0xff]  }
 0x15a   :  { %1264 = vmatprep.subr.bf16.mxu0 %v2938_v3  ;;  %1346 = vmatprep.subr.bf16.mxu1 %v2941_v5  ;;  %v3016_v3 = vld [vmem:[#allocation6 + $0x164] ss:$16 sps:$4 sm:$0xff]   ;;  %v3019_v5 = vld [vmem:[#allocation6 + $0x16c] ss:$16 sps:$4 sm:$0xff]  }
 0x15d   :  { %1265 = vmatpush1.bf16.msra.mxu0 %v2936_v6  ;;  %1347 = vmatpush1.bf16.msra.mxu1 %v2939_v7  ;;  %v3014_v6 = vld [vmem:[#allocation6 + $0x160] ss:$16 sps:$4 sm:$0xff]   ;;  %v3017_v7 = vld [vmem:[#allocation6 + $0x168] ss:$16 sps:$4 sm:$0xff]  }
 0x15e   :  { %1266 = vmatprep.subr.bf16.mxu0 %v2944_v11  ;;  %1348 = vmatprep.subr.bf16.mxu1 %v2947_v12  ;;  %v3020_v11 = vld [vmem:[#allocation6 + $0x180] ss:$16 sps:$4 sm:$0xff]   ;;  %v3023_v12 = vld [vmem:[#allocation6 + $0x188] ss:$16 sps:$4 sm:$0xff]  }
 0x161   :  { %1267 = vmatpush1.bf16.msra.mxu0 %v2942_v44  ;;  %1349 = vmatpush1.bf16.msra.mxu1 %v2945_v14  ;;  %v3028_v44 = vld [vmem:[#allocation6 + $0x1a4] ss:$16 sps:$4 sm:$0xff]   ;;  %v3031_v14 = vld [vmem:[#allocation6 + $0x1ac] ss:$16 sps:$4 sm:$0xff]  }
 0x162   :  { %2157 = vmatprep.subr.bf16.mxu0 %v2950_v16  ;;  %2239 = vmatprep.subr.bf16.mxu1 %v2953_v17  ;;  %v3029_v16 = vld [vmem:[#allocation6 + $0x1a8] ss:$16 sps:$4 sm:$0xff]   ;;  %v3034_v17 = vld [vmem:[#allocation6 + $0x1c4] ss:$16 sps:$4 sm:$0xff]  }
 0x164   :  { %1269 = vmatmul.mubr.bf16.vlgmr.msra.gmra.mrb[4].mxu0 %v403_v19  ;;  %1351 = vmatmul.mubr.bf16.vlgmr.msra.gmra.mrb[4].mxu1 %v403_v19  ;;  %v3035_v19 = vld [vmem:[#allocation6 + $0x1c8] ss:$16 sps:$4 sm:$0xff]  }
 0x165   :  { %2158 = vmatpush1.bf16.msra.mxu0 %v2948_v4  ;;  %2240 = vmatpush1.bf16.msra.mxu1 %v2951_v18  ;;  %v3037_v4 = vld [vmem:[#allocation6 + $0x1cc] ss:$16 sps:$4 sm:$0xff]   ;;  %v3032_v18 = vld [vmem:[#allocation6 + $0x1c0] ss:$16 sps:$4 sm:$0xff]  }
 0x166   :  { %2159 = vmatprep.subr.bf16.mxu0 %v2956_v40  ;;  %2241 = vmatprep.subr.bf16.mxu1 %v2959_v20  ;;  %v3040_v40 = vld [vmem:[#allocation6 + $0x1e4] ss:$16 sps:$4 sm:$0xff]   ;;  %v3043_v20 = vld [vmem:[#allocation6 + $0x1ec] ss:$16 sps:$4 sm:$0xff]  }
 0x169   :  { %2160 = vmatpush1.bf16.msra.mxu0 %v2954_v21  ;;  %2242 = vmatpush1.bf16.msra.mxu1 %v2957_v22  ;;  %v3038_v21 = vld [vmem:[#allocation6 + $0x1e0] ss:$16 sps:$4 sm:$0xff]   ;;  %v3041_v22 = vld [vmem:[#allocation6 + $0x1e8] ss:$16 sps:$4 sm:$0xff]  }
 0x16a   :  { %2161 = vmatprep.subr.bf16.mxu0 %v2962_v23  ;;  %2243 = vmatprep.subr.bf16.mxu1 %v2965_v24  ;;  %v3046_v23 = vld [vmem:[#allocation6 + $0x204] ss:$16 sps:$4 sm:$0xff]   ;;  %v3049_v24 = vld [vmem:[#allocation6 + $0x20c] ss:$16 sps:$4 sm:$0xff]  }
 0x16d   :  { %2162 = vmatpush1.bf16.msra.mxu0 %v2960_v25  ;;  %2244 = vmatpush1.bf16.msra.mxu1 %v2963_v26 }
 0x16e   :  { %2163 = vmatprep.subr.bf16.mxu0 %v2968_v27  ;;  %2245 = vmatprep.subr.bf16.mxu1 %v2971_v28  ;;  %v2386_v27 = vld [vmem:[%s3525_s7] ss:$0 sm:$0xff] }
 0x171   :  { %2164 = vmatpush1.bf16.msra.mxu0 %v2966_v29  ;;  %2246 = vmatpush1.bf16.msra.mxu1 %v2969_v30  ;;  %v3140_v29 = vld [vmem:[%s3518_s0] sm:$0xff] }
 0x172   :  { %2165 = vmatprep.subr.bf16.mxu0 %v2974_v31  ;;  %2247 = vmatprep.subr.bf16.mxu1 %v2977_v32  ;;  %v88_v30 = vmul.f32 %v3140_v29, %v3140_v29  ;;  %v2387_v32 = vld [vmem:[%s3526_s8] ss:$0 sm:$0xff]  ;;  %v3094_v29 = vld [vmem:[#allocation6 + $0x304] ss:$16 sps:$4 sm:$0xff]  }
 0x175   :  { %2166 = vmatpush1.bf16.msra.mxu0 %v2972_v33  ;;  %2248 = vmatpush1.bf16.msra.mxu1 %v2975_v34  ;;  %v96_v33 = vmul.f32 %v2387_v32, %v88_v30  ;;  %v3097_v30 = vld [vmem:[#allocation6 + $0x30c] ss:$16 sps:$4 sm:$0xff]   ;;  %v3095_v32 = vld [vmem:[#allocation6 + $0x308] ss:$16 sps:$4 sm:$0xff]  }
 0x176   :  { %2167 = vmatprep.subr.bf16.mxu0 %v2980_v35  ;;  %2249 = vmatprep.subr.bf16.mxu1 %v2983_v36 }
 0x179   :  { %2168 = vmatpush1.bf16.msra.mxu0 %v2978_v37  ;;  %2250 = vmatpush1.bf16.msra.mxu1 %v2981_v38 }
 0x17a   :  { %2169 = vmatprep.subr.bf16.mxu0 %v2986_v39  ;;  %2251 = vmatprep.subr.bf16.mxu1 %v2989_v10 }
 0x17d   :  { %2170 = vmatpush1.bf16.msra.mxu0 %v2984_v46  ;;  %2252 = vmatpush1.bf16.msra.mxu1 %v2987_v47 }
 0x17e   :  { %2171 = vmatprep.subr.bf16.mxu0 %v2992_v48  ;;  %2253 = vmatprep.subr.bf16.mxu1 %v2995_v49 }
 0x181   :  { %2172 = vmatpush1.bf16.msra.mxu0 %v2990_v50  ;;  %2254 = vmatpush1.bf16.msra.mxu1 %v2993_v51 }
 0x182   :  { %2173 = vmatprep.subr.bf16.mxu0 %v2998_v52  ;;  %2255 = vmatprep.subr.bf16.mxu1 %v3001_v53 }
 0x185   :  { %2174 = vmatpush1.bf16.msra.mxu0 %v2996_v54  ;;  %2256 = vmatpush1.bf16.msra.mxu1 %v2999_v56 }
 0x186   :  { %2175 = vmatprep.subr.bf16.mxu0 %v3004_v57  ;;  %2257 = vmatprep.subr.bf16.mxu1 %v3007_v58 }
 0x189   :  { %2176 = vmatpush1.bf16.msra.mxu0 %v3002_v59  ;;  %2258 = vmatpush1.bf16.msra.mxu1 %v3005_v61  ;;  %v3044_v59 = vld [vmem:[#allocation6 + $0x200] ss:$16 sps:$4 sm:$0xff]   ;;  %v3047_v61 = vld [vmem:[#allocation6 + $0x208] ss:$16 sps:$4 sm:$0xff]  }
 0x18a   :  { %2177 = vmatprep.subr.bf16.mxu0 %v3010_v62  ;;  %2259 = vmatprep.subr.bf16.mxu1 %v3013_v63  ;;  %v3052_v63 = vld [vmem:[#allocation6 + $0x224] ss:$16 sps:$4 sm:$0xff]  }
 0x18d   :  { %2178 = vmatpush1.bf16.msra.mxu0 %v3008_v1  ;;  %2260 = vmatpush1.bf16.msra.mxu1 %v3011_v2  ;;  %v3055_v1 = vld [vmem:[#allocation6 + $0x22c] ss:$16 sps:$4 sm:$0xff]  }
 0x18e   :  { %2179 = vmatprep.subr.bf16.mxu0 %v3016_v3  ;;  %2261 = vmatprep.subr.bf16.mxu1 %v3019_v5  ;;  %v3050_v3 = vld [vmem:[#allocation6 + $0x220] ss:$16 sps:$4 sm:$0xff]   ;;  %v3053_v5 = vld [vmem:[#allocation6 + $0x228] ss:$16 sps:$4 sm:$0xff]  }
 0x191   :  { %2180 = vmatpush1.bf16.msra.mxu0 %v3014_v6  ;;  %2262 = vmatpush1.bf16.msra.mxu1 %v3017_v7  ;;  %v3058_v6 = vld [vmem:[#allocation6 + $0x244] ss:$16 sps:$4 sm:$0xff]   ;;  %v3061_v7 = vld [vmem:[#allocation6 + $0x24c] ss:$16 sps:$4 sm:$0xff]  }
 0x192   :  { %2181 = vmatprep.subr.bf16.mxu0 %v3022_v8  ;;  %2263 = vmatprep.subr.bf16.mxu1 %v3025_v9  ;;  %v3056_v8 = vld [vmem:[#allocation6 + $0x240] ss:$16 sps:$4 sm:$0xff]   ;;  %v3059_v9 = vld [vmem:[#allocation6 + $0x248] ss:$16 sps:$4 sm:$0xff]  }
 0x195   :  { %2182 = vmatpush1.bf16.msra.mxu0 %v3020_v11  ;;  %2264 = vmatpush1.bf16.msra.mxu1 %v3023_v12  ;;  %v3064_v11 = vld [vmem:[#allocation6 + $0x264] ss:$16 sps:$4 sm:$0xff]   ;;  %v3067_v12 = vld [vmem:[#allocation6 + $0x26c] ss:$16 sps:$4 sm:$0xff]  }
 0x196   :  { %2183 = vmatprep.subr.bf16.mxu0 %v3028_v44  ;;  %2265 = vmatprep.subr.bf16.mxu1 %v3031_v14  ;;  %v3062_v44 = vld [vmem:[#allocation6 + $0x260] ss:$16 sps:$4 sm:$0xff]   ;;  %v3065_v14 = vld [vmem:[#allocation6 + $0x268] ss:$16 sps:$4 sm:$0xff]  }
 0x199   :  { %2184 = vmatpush1.bf16.msra.mxu0 %v3026_v15  ;;  %2266 = vmatpush1.bf16.msra.mxu1 %v3029_v16  ;;  %v3070_v15 = vld [vmem:[#allocation6 + $0x284] ss:$16 sps:$4 sm:$0xff]   ;;  %v3073_v16 = vld [vmem:[#allocation6 + $0x28c] ss:$16 sps:$4 sm:$0xff]  }
 0x19a   :  { %2185 = vmatprep.subr.bf16.mxu0 %v3034_v17  ;;  %2267 = vmatprep.subr.bf16.mxu1 %v3037_v4  ;;  %v3068_v17 = vld [vmem:[#allocation6 + $0x280] ss:$16 sps:$4 sm:$0xff]   ;;  %v3071_v4 = vld [vmem:[#allocation6 + $0x288] ss:$16 sps:$4 sm:$0xff]  }
 0x19d   :  { %2186 = vmatpush1.bf16.msra.mxu0 %v3032_v18  ;;  %2268 = vmatpush1.bf16.msra.mxu1 %v3035_v19  ;;  %v3076_v18 = vld [vmem:[#allocation6 + $0x2a4] ss:$16 sps:$4 sm:$0xff]   ;;  %v3079_v19 = vld [vmem:[#allocation6 + $0x2ac] ss:$16 sps:$4 sm:$0xff]  }
 0x19e   :  { %2187 = vmatprep.subr.bf16.mxu0 %v3040_v40  ;;  %2269 = vmatprep.subr.bf16.mxu1 %v3043_v20  ;;  %v3074_v40 = vld [vmem:[#allocation6 + $0x2a0] ss:$16 sps:$4 sm:$0xff]   ;;  %v3077_v20 = vld [vmem:[#allocation6 + $0x2a8] ss:$16 sps:$4 sm:$0xff]  }
 0x1a1   :  { %2188 = vmatpush1.bf16.msra.mxu0 %v3038_v21  ;;  %2270 = vmatpush1.bf16.msra.mxu1 %v3041_v22  ;;  %v3082_v21 = vld [vmem:[#allocation6 + $0x2c4] ss:$16 sps:$4 sm:$0xff]   ;;  %v3085_v22 = vld [vmem:[#allocation6 + $0x2cc] ss:$16 sps:$4 sm:$0xff]  }
 0x1a2   :  { %2198 = vmatprep.subr.bf16.mxu0 %v3046_v23  ;;  %2280 = vmatprep.subr.bf16.mxu1 %v3049_v24  ;;  %v77_v25 = vpop.permute.xlu1 %76  ;;  %v3080_v23 = vld [vmem:[#allocation6 + $0x2c0] ss:$16 sps:$4 sm:$0xff]   ;;  %v3083_v24 = vld [vmem:[#allocation6 + $0x2c8] ss:$16 sps:$4 sm:$0xff]  }
 0x1a3   :  { %v78_v26 = vadd.f32 %v77_v25, %v3452_v13  ;;  %v3470_v13 = vld [vmem:[%s3522_s4] sm:$0xf]  ;;  %v3088_v25 = vld [vmem:[#allocation6 + $0x2e4] ss:$16 sps:$4 sm:$0xff]  }
 0x1a4   :  { %v538_v35 = vrot.slane %v3470_v13, %v3421_v43  ;;  %v542_v36 = vrot.slane %v3470_v13, %v3429_v45  ;;  %v550_v37 = vrot.slane %v3470_v13, %v3436_v55 }
 0x1a5   :  { %v79_v28 = vmul.f32 %v78_v26, %v78_v26  ;;  %v3091_v26 = vld [vmem:[#allocation6 + $0x2ec] ss:$16 sps:$4 sm:$0xff]  }
 0x1a7   :  { %v87_v31 = vmul.f32 %v2386_v27, %v79_v28  ;;  %v3086_v27 = vld [vmem:[#allocation6 + $0x2e0] ss:$16 sps:$4 sm:$0xff]   ;;  %v3089_v28 = vld [vmem:[#allocation6 + $0x2e8] ss:$16 sps:$4 sm:$0xff]  }
 0x1a9   :  { %v97_v34 = vsub.f32 %v87_v31, %v96_v33  ;;  %v3092_v31 = vld [vmem:[#allocation6 + $0x300] ss:$16 sps:$4 sm:$0xff]   ;;  %v3100_v33 = vld [vmem:[#allocation6 + $0x324] ss:$16 sps:$4 sm:$0xff]  }
 0x1ab   :  { %98 = vadd.xlane.f32.xlu1 %v97_v34  ;;  %v3103_v34 = vld [vmem:[#allocation6 + $0x32c] ss:$16 sps:$4 sm:$0xff]  }
 0x237   :  { %v1270_v38 = vpop.f32.mrb[4].mxu0  ;;  %v3478_v39 = vpop.f32.mrb[4].mxu1 }
 0x238   :  { %v2676_v10 = vadd.f32 %v1270_v38, %v538_v35  ;;  %v1272_v46 = vpop.f32.mrb[5].mxu0  ;;  %v1354_v47 = vpop.f32.mrb[5].mxu1  ;;  %v3098_v35 = vld [vmem:[#allocation6 + $0x320] ss:$16 sps:$4 sm:$0xff]   ;;  %v3109_v38 = vld [vmem:[#allocation6 + $0x34c] ss:$16 sps:$4 sm:$0xff]  }
 0x239   :  { %v2677_v48 = vadd.f32 %v1272_v46, %v542_v36  ;;  %v2679_v49 = vadd.f32 %v1354_v47, %v550_v37  ;;  %v1274_v50 = vpop.f32.mrb[6].mxu0  ;;  %v1356_v51 = vpop.f32.mrb[6].mxu1  ;;  %v3101_v36 = vld [vmem:[#allocation6 + $0x328] ss:$16 sps:$4 sm:$0xff]   ;;  %v3106_v37 = vld [vmem:[#allocation6 + $0x344] ss:$16 sps:$4 sm:$0xff]  }
 0x23a   :  { %v1359_v52 = vpack.c.bf16 %v2676_v10, %v2676_v10  ;;  %v1275_v53 = vpop.f32.mrb[7].mxu0  ;;  %v1357_v54 = vpop.f32.mrb[7].mxu1  ;;  %v3104_v10 = vld [vmem:[#allocation6 + $0x340] ss:$16 sps:$4 sm:$0xff]   ;;  %v3107_v46 = vld [vmem:[#allocation6 + $0x348] ss:$16 sps:$4 sm:$0xff]  }
 0x23b   :  { %v1360_v56 = vpack.c.bf16 %v2677_v48, %v2677_v48  ;;  %v1362_v57 = vpack.c.bf16 %v2679_v49, %v2679_v49  ;;  %v3112_v47 = vld [vmem:[#allocation6 + $0x364] ss:$16 sps:$4 sm:$0xff]   ;;  %v3115_v48 = vld [vmem:[#allocation6 + $0x36c] ss:$16 sps:$4 sm:$0xff]   ;;  %v3110_v49 = vld [vmem:[#allocation6 + $0x360] ss:$16 sps:$4 sm:$0xff]  }
 0x23c   :  { %v1363_v62 = vmax.bf16 %v3217_v0, %v1359_v52  ;;  %v3113_v50 = vld [vmem:[#allocation6 + $0x368] ss:$16 sps:$4 sm:$0xff]   ;;  %v3118_v51 = vld [vmem:[#allocation6 + $0x384] ss:$16 sps:$4 sm:$0xff]   ;;  %v3121_v52 = vld [vmem:[#allocation6 + $0x38c] ss:$16 sps:$4 sm:$0xff]  }
 0x23d   :  { %v1364_v58 = vmax.bf16 %v3217_v0, %v1360_v56  ;;  %v1366_v2 = vmax.bf16 %v3217_v0, %v1362_v57  ;;  %v3116_v53 = vld [vmem:[#allocation6 + $0x380] ss:$16 sps:$4 sm:$0xff]   ;;  %v3119_v54 = vld [vmem:[#allocation6 + $0x388] ss:$16 sps:$4 sm:$0xff]   ;;  %v3124_v56 = vld [vmem:[#allocation6 + $0x3a4] ss:$16 sps:$4 sm:$0xff]  }
 0x23e   :  { %v3127_v57 = vld [vmem:[#allocation6 + $0x3ac] ss:$16 sps:$4 sm:$0xff]  }
 0x23f   :  { %2189 = vmatprep.mubr.bf16.mxu0 %v1364_v58  ;;  %2271 = vmatprep.mubr.bf16.mxu1 %v1364_v58  ;;  %v3122_v58 = vld [vmem:[#allocation6 + $0x3a0] ss:$16 sps:$4 sm:$0xff]  }
 0x240   :  { %2190 = vmatmul.mubr.bf16.vlgmr.msra.gmra.mrb[8].mxu0 %v1363_v62  ;;  %2272 = vmatmul.mubr.bf16.vlgmr.msra.gmra.mrb[8].mxu1 %v1363_v62  ;;  %v3130_v62 = vld [vmem:[#allocation6 + $0x3c4] ss:$16 sps:$4 sm:$0xff]  }
 0x241   :  { %2199 = vmatpush1.bf16.msra.mxu0 %v3044_v59  ;;  %2281 = vmatpush1.bf16.msra.mxu1 %v3047_v61  ;;  %v3125_v59 = vld [vmem:[#allocation6 + $0x3a8] ss:$16 sps:$4 sm:$0xff]   ;;  %v546_v61 = vrot.slane %v3470_v13, %v3446_v60 }
 0x242   :  { %2230 = vmatprep.mubr.bf16.mxu0 %v1366_v2  ;;  %2312 = vmatprep.mubr.bf16.mxu1 %v1366_v2  ;;  %v3131_v2 = vld [vmem:[#allocation6 + $0x3c8] ss:$16 sps:$4 sm:$0xff]  }
 0x243   :  { %2200 = vmatprep.subr.bf16.mxu0 %v3052_v63  ;;  %2282 = vmatprep.subr.bf16.mxu1 %v3055_v1  ;;  %v3133_v63 = vld [vmem:[#allocation6 + $0x3cc] ss:$16 sps:$4 sm:$0xff]   ;;  %v3128_v1 = vld [vmem:[#allocation6 + $0x3c0] ss:$16 sps:$4 sm:$0xff]  }
 0x245   :  { %2201 = vmatpush1.bf16.msra.mxu0 %v3050_v3  ;;  %2283 = vmatpush1.bf16.msra.mxu1 %v3053_v5  ;;  %v2678_v3 = vadd.f32 %v3478_v39, %v546_v61  ;;  %v3136_v5 = vld [vmem:[#allocation6 + $0x3e4] ss:$16 sps:$4 sm:$0xff]   ;;  %v1495_v39 = vld [vmem:[%s3524_s6] sm:$0xf] }
 0x246   :  { %2202 = vmatprep.subr.bf16.mxu0 %v3058_v6  ;;  %2284 = vmatprep.subr.bf16.mxu1 %v3061_v7  ;;  %v3139_v6 = vld [vmem:[#allocation6 + $0x3ec] ss:$16 sps:$4 sm:$0xff]   ;;  %v3134_v7 = vld [vmem:[#allocation6 + $0x3e0] ss:$16 sps:$4 sm:$0xff]  }
 0x249   :  { %2203 = vmatpush1.bf16.msra.mxu0 %v3056_v8  ;;  %2285 = vmatpush1.bf16.msra.mxu1 %v3059_v9  ;;  %v3137_v8 = vld [vmem:[#allocation6 + $0x3e8] ss:$16 sps:$4 sm:$0xff]   ;;  %v1361_v9 = vpack.c.bf16 %v2678_v3, %v2678_v3 }
 0x24a   :  { %2204 = vmatprep.subr.bf16.mxu0 %v3064_v11  ;;  %2286 = vmatprep.subr.bf16.mxu1 %v3067_v12  ;;  %v1500_v11 = vrot.slane %v1495_v39, %v3421_v43  ;;  %v1508_v12 = vrot.slane %v1495_v39, %v3446_v60 }
 0x24b   :  { %v1365_v13 = vmax.bf16 %v3217_v0, %v1361_v9 }
 0x24d   :  { %2205 = vmatpush1.bf16.msra.mxu0 %v3062_v44  ;;  %2287 = vmatpush1.bf16.msra.mxu1 %v3065_v14  ;;  %v2325_v44 = vld [vmem:[%s3527_s9] sm:$0xf]  ;;  %v1504_v14 = vrot.slane %v1495_v39, %v3429_v45 }
 0x24e   :  { %2206 = vmatprep.subr.bf16.mxu0 %v3070_v15  ;;  %2288 = vmatprep.subr.bf16.mxu1 %v3073_v16  ;;  %v1512_v15 = vrot.slane %v1495_v39, %v3436_v55 }
 0x251   :  { %2207 = vmatpush1.bf16.msra.mxu0 %v3068_v17  ;;  %2289 = vmatpush1.bf16.msra.mxu1 %v3071_v4  ;;  %v2330_v4 = vrot.slane %v2325_v44, %v3421_v43  ;;  %v2342_v43 = vrot.slane %v2325_v44, %v3436_v55 }
 0x252   :  { %2208 = vmatprep.subr.bf16.mxu0 %v3076_v18  ;;  %2290 = vmatprep.subr.bf16.mxu1 %v3079_v19 }
 0x255   :  { %2209 = vmatpush1.bf16.msra.mxu0 %v3074_v40  ;;  %2291 = vmatpush1.bf16.msra.mxu1 %v3077_v20 }
 0x256   :  { %2210 = vmatprep.subr.bf16.mxu0 %v3082_v21  ;;  %2292 = vmatprep.subr.bf16.mxu1 %v3085_v22  ;;  %v2334_v21 = vrot.slane %v2325_v44, %v3429_v45 }
 0x259   :  { %2211 = vmatpush1.bf16.msra.mxu0 %v3080_v23  ;;  %2293 = vmatpush1.bf16.msra.mxu1 %v3083_v24 }
 0x25a   :  { %2212 = vmatprep.subr.bf16.mxu0 %v3088_v25  ;;  %2294 = vmatprep.subr.bf16.mxu1 %v3091_v26 }
 0x25d   :  { %2213 = vmatpush1.bf16.msra.mxu0 %v3086_v27  ;;  %2295 = vmatpush1.bf16.msra.mxu1 %v3089_v28 }
 0x25e   :  { %2214 = vmatprep.subr.bf16.mxu0 %v3094_v29  ;;  %2296 = vmatprep.subr.bf16.mxu1 %v3097_v30  ;;  %v2338_v29 = vrot.slane %v2325_v44, %v3446_v60 }
 0x261   :  { %2215 = vmatpush1.bf16.msra.mxu0 %v3092_v31  ;;  %2297 = vmatpush1.bf16.msra.mxu1 %v3095_v32 }
 0x262   :  { %2216 = vmatprep.subr.bf16.mxu0 %v3100_v33  ;;  %2298 = vmatprep.subr.bf16.mxu1 %v3103_v34 }
 0x265   :  { %2217 = vmatpush1.bf16.msra.mxu0 %v3098_v35  ;;  %2299 = vmatpush1.bf16.msra.mxu1 %v3101_v36 }
 0x266   :  { %2218 = vmatprep.subr.bf16.mxu0 %v3106_v37  ;;  %2300 = vmatprep.subr.bf16.mxu1 %v3109_v38  ;;  %v2362_v38 = vand.u32 127, %v135_v41 }
 0x269   :  { %2219 = vmatpush1.bf16.msra.mxu0 %v3104_v10  ;;  %2301 = vmatpush1.bf16.msra.mxu1 %v3107_v46  ;;  %v99_v10 = vpop.xlane.xlu1 %98  ;;  %v2358_v46 = vstv %s3528_s10 }
 0x26a   :  { %2220 = vmatprep.subr.bf16.mxu0 %v3112_v47  ;;  %2302 = vmatprep.subr.bf16.mxu1 %v3115_v48  ;;  %v2365_v47 = vsub.s32 %v2362_v38, %v3418_v42 }
 0x26d   :  { %2221 = vmatpush1.bf16.msra.mxu0 %v3110_v49  ;;  %2303 = vmatpush1.bf16.msra.mxu1 %v3113_v50 }
 0x26e   :  { %2222 = vmatprep.subr.bf16.mxu0 %v3118_v51  ;;  %2304 = vmatprep.subr.bf16.mxu1 %v3121_v52 }
 0x271   :  { %2223 = vmatpush1.bf16.msra.mxu0 %v3116_v53  ;;  %2305 = vmatpush1.bf16.msra.mxu1 %v3119_v54 }
 0x272   :  { %2224 = vmatprep.subr.bf16.mxu0 %v3124_v56  ;;  %2306 = vmatprep.subr.bf16.mxu1 %v3127_v57 }
 0x275   :  { %2225 = vmatpush1.bf16.msra.mxu0 %v3122_v58  ;;  %2307 = vmatpush1.bf16.msra.mxu1 %v3125_v59 }
 0x276   :  { %2226 = vmatprep.subr.bf16.mxu0 %v3130_v62  ;;  %2308 = vmatprep.subr.bf16.mxu1 %v3133_v63 }
 0x279   :  { %2227 = vmatpush1.bf16.msra.mxu0 %v3128_v1  ;;  %2309 = vmatpush1.bf16.msra.mxu1 %v3131_v2 }
 0x27a   :  { %2228 = vmatprep.subr.bf16.mxu0 %v3136_v5  ;;  %2310 = vmatprep.subr.bf16.mxu1 %v3139_v6 }
 0x27d   :  { %2229 = vmatpush1.bf16.msra.mxu0 %v3134_v7  ;;  %2311 = vmatpush1.bf16.msra.mxu1 %v3137_v8 }
 0x280   :  { %2231 = vmatmul.mubr.bf16.vlgmr.msra.gmra.mrb[8].mxu0 %v1365_v13  ;;  %2313 = vmatmul.mubr.bf16.vlgmr.msra.gmra.mrb[8].mxu1 %v1365_v13 }
 0x353   :  { %v2232_v16 = vpop.f32.mrb[8].mxu0  ;;  %v2314_v0 = vpop.f32.mrb[8].mxu1 }
 0x354   :  { %v2680_v17 = vadd.f32 %v2232_v16, %v1500_v11  ;;  %v2682_v18 = vadd.f32 %v2314_v0, %v1508_v12  ;;  %v2234_v19 = vpop.f32.mrb[9].mxu0  ;;  %v2316_v40 = vpop.f32.mrb[9].mxu1 }
 0x355   :  { %v2681_v20 = vadd.f32 %v2234_v19, %v1504_v14  ;;  %v2683_v22 = vadd.f32 %v2316_v40, %v1512_v15  ;;  %v2236_v23 = vpop.f32.mrb[10].mxu0  ;;  %v2318_v24 = vpop.f32.mrb[10].mxu1 }
 0x356   :  { %v2321_v25 = vmax.f32 %v2680_v17, 0.0  ;;  %v2237_v26 = vpop.f32.mrb[11].mxu0  ;;  %v2319_v27 = vpop.f32.mrb[11].mxu1  ;;  %v2323_v28 = vmax.f32 %v2682_v18, 0.0 }
 0x357   :  { %v2322_v30 = vmax.f32 %v2681_v20, 0.0  ;;  %v2324_v33 = vmax.f32 %v2683_v22, 0.0 }
 0x358   :  { %v2347_v31 = vmul.f32 %v2330_v4, %v2321_v25  ;;  %v2349_v34 = vmul.f32 %v2338_v29, %v2323_v28 }
 0x359   :  { %v2348_v32 = vmul.f32 %v2334_v21, %v2322_v30  ;;  %v2350_v36 = vmul.f32 %v2342_v43, %v2324_v33 }
 0x35b   :  { %v2351_v35 = vadd.f32 %v2348_v32, %v2347_v31 }
 0x35d   :  { %v2352_v37 = vadd.f32 %v2351_v35, %v2349_v34 }
 0x35f   :  { %v2353_v45 = vadd.f32 %v2352_v37, %v2350_v36 }
 0x361   :  { %2354 = vadd.xlane.f32.xlu0 %v2353_v45 }
 0x3ee   :  { %v2355_v60 = vpop.xlane.xlu0 %2354 }
 0x3ef   :  { %v2356_v48 = vadd.f32 %v2355_v60, %v99_v10 }
 0x3f1   :  { %v2359_v55 = vadd.f32 %v2358_v46, %v2356_v48 }
 0x3f3   :  { %v2366_v49 = vrot.slane %v2359_v55, %v2365_v47 }
 0x3f5   :  { %2369 = vst.msk [vmem:[#allocation8] sm:$0x1] %vm2368_vm0, %v2366_v49 }
 0x3f6   :  { %3196 = shalt.err (!%p3193_p6)
}
 0x3f7   :  { %s3197_s23 = scalar_lea.hbm %s3529_s11, 16 }
 0x3f8   :  { %p3198_p7 = scmp.ne.s32.totalorder %s3529_s11, %s3197_s23  ;;  %p3201_p8 = scmp.lt.u32.totalorder %s3197_s23, %s3529_s11 }
 0x3fa   :  { %p3203_p9 = pnand %p3201_p8, %p3198_p7 }
 0x3fc   :  { %3206 = shalt.err (!%p3203_p9)
}
 0x3fd   :  { %2379 = dma.vmem_to_hbm [thread:$0]  %s2377_s21, 16, %s3529_s11, [#allocation5]  }
 0x3fe   :  { %3211 = dma.done.wait [#allocation5], 16  }
 0x3ff   :  { %3212 = vsyncadd [#allocation5], 4294967280 }
 0x400   :  { %2383 = vsyncpa [#allocation4], 1 }
 0x401   :  { %2384 = vsyncpa [#allocation7], 1 }
 0x402   :  { %2385 = vsyncpa [#allocation5], 1 }

</bundles_post_ra>
